<compile_context>
chip_gen: v7x
topology: tpu7x:2x2x1
jax: 0.10.0
libtpu: 0.0.40
codegen_flags: <defaults>
</compile_context>

<pallas_src>
import numpy as np
import jax
import jax.numpy as jnp
from jax.experimental import pallas as pl
from jax.experimental.pallas import tpu as pltpu

GM_SIGMA_SQ = 200.0          # gmof(squared_res, 200) in keypoints_2d_loss
_LANE = 128
_CAM_CH = 22                 # per view: K(9) + R(9) + T(3) + scale(1)
_LOSS_NAMES = ("kp3d", "kp2d", "smooth_kpts", "smooth_pose", "reg_pose", "reg_shape")


def _round_up(x, m):
    return ((x + m - 1) // m) * m


def _pick_frame_tile(B, Vp, itemsize):
    """Frames sit on the lane axis, so tiles must be multiples of 128 (or all of B)."""
    candidates = [tb for tb in (256, 128) if B % tb == 0 and B // tb >= 2]
    budget = 24 * 2 ** 20                      # double-buffered vertices block budget
    for tb in candidates:
        if 2 * Vp * 3 * tb * itemsize <= budget:
            return tb
    if candidates:
        return candidates[-1]                  # smallest lane-aligned tile (128)
    return B                                   # small / non-aligned batch: one tile


def _smplify_kp_kernel(jreg_ref,     # (Jp, Vp)         matmul dtype
                       verts_ref,    # (1, Vp, 3*TB)    matmul dtype (x|y|z frame blocks)
                       kpts3d_ref,   # (4, Jp, TB)      f32  (x, y, z, conf; padded conf=0)
                       kpts2d_ref,   # (3, NV, Jp, TB)  f32  (x, y, conf; padded conf=0)
                       cam_ref,      # (Cp, TB)         f32  packed K|R|T|scale per view
                       kp3d_ref,     # (1, 8, 128)      f32  per-tile partial sum
                       kp2d_ref,     # (1, 8, 128)      f32  per-tile partial sum
                       predj_ref):   # (3, Jp, TB)      f32  predicted joints (smooth_kpts)
    f32 = jnp.float32
    TB = kpts3d_ref.shape[2]
    NV = kpts2d_ref.shape[1]

    # --- joint regression: one fused MXU matmul, joints on sublanes ---------------
    pj = jnp.dot(jreg_ref[...], verts_ref[0], preferred_element_type=f32)   # (Jp, 3*TB)
    px = pj[:, 0 * TB:1 * TB]
    py = pj[:, 1 * TB:2 * TB]
    pz = pj[:, 2 * TB:3 * TB]
    predj_ref[0, :, :] = px
    predj_ref[1, :, :] = py
    predj_ref[2, :, :] = pz

    # --- keypoints_3d_loss: sum(((pred - gt) * conf)^2); padded joints conf = 0 ---
    c3 = kpts3d_ref[3]
    dx = (px - kpts3d_ref[0]) * c3
    dy = (py - kpts3d_ref[1]) * c3
    dz = (pz - kpts3d_ref[2]) * c3
    kp3d_ref[...] = jnp.broadcast_to(jnp.sum(dx * dx + dy * dy + dz * dz), (1, 8, _LANE))

    # --- keypoints_2d_loss: pinhole projection + Geman-McClure, per view ----------
    gm = jnp.zeros(px.shape, f32)
    for v in range(NV):                        # NV tiny & static -> unrolled view loop
        base = v * _CAM_CH

        def cam(c, _b=base):                   # (1, TB) row, broadcasts across joints
            return cam_ref[_b + c:_b + c + 1, :]

        cx = cam(9) * px + cam(10) * py + cam(11) * pz + cam(18)
        cy = cam(12) * px + cam(13) * py + cam(14) * pz + cam(19)
        cz = cam(15) * px + cam(16) * py + cam(17) * pz + cam(20)
        nx = cx / cz
        ny = cy / cz
        u = cam(0) * nx + cam(1) * ny + cam(2)
        w = cam(3) * nx + cam(4) * ny + cam(5)
        inv_den = 1.0 / ((0.001 + cam(21)) * 200.0)        # exact, matches reference
        conf = kpts2d_ref[2, v]                             # padded joints -> 0
        ru = (u - kpts2d_ref[0, v]) * conf * inv_den
        rv = (w - kpts2d_ref[1, v]) * conf * inv_den
        squ = ru * ru
        sqv = rv * rv
        gm = gm + squ / (GM_SIGMA_SQ + squ) + sqv / (GM_SIGMA_SQ + sqv)
    kp2d_ref[...] = jnp.broadcast_to(GM_SIGMA_SQ * jnp.sum(gm), (1, 8, _LANE))


def _build_kernel_call(B, V, J, NV, TB, matmul_dtype):
    f32 = jnp.float32
    nb = B // TB
    Jp = _round_up(max(J, 8), 8)
    Vp = _round_up(V, _LANE)
    Cp = _round_up(NV * _CAM_CH, 8)
    itemsize = np.dtype(matmul_dtype).itemsize

    in_specs = [
        # grid-invariant J_regressor (see TODO on pl.Buffered(1) single-buffering)
        pl.BlockSpec((Jp, Vp), lambda i: (0, 0)),
        pl.BlockSpec((1, Vp, 3 * TB), lambda i: (i, 0, 0)),        # vertices frame tile
        pl.BlockSpec((4, Jp, TB), lambda i: (0, 0, i)),            # kpts3d
        pl.BlockSpec((3, NV, Jp, TB), lambda i: (0, 0, 0, i)),     # kpts2d
        pl.BlockSpec((Cp, TB), lambda i: (0, i)),                  # packed cameras
    ]
    out_specs = [
        pl.BlockSpec((1, 8, _LANE), lambda i: (i, 0, 0)),          # kp3d partial
        pl.BlockSpec((1, 8, _LANE), lambda i: (i, 0, 0)),          # kp2d partial
        pl.BlockSpec((3, Jp, TB), lambda i: (0, 0, i)),            # predicted joints
    ]
    out_shape = [
        jax.ShapeDtypeStruct((nb, 8, _LANE), f32),
        jax.ShapeDtypeStruct((nb, 8, _LANE), f32),
        jax.ShapeDtypeStruct((3, Jp, B), f32),
    ]

    block_bytes = (Jp * Vp * itemsize
                   + Vp * 3 * TB * itemsize
                   + 4 * Jp * TB * 4
                   + 3 * NV * Jp * TB * 4
                   + Cp * TB * 4
                   + 2 * 8 * _LANE * 4
                   + 3 * Jp * TB * 4)
    try:                                        # generation-aware scoped-VMEM budget
        vmem_cap = int(getattr(pltpu.get_tpu_info(), "vmem_capacity_bytes", 64 * 2 ** 20))
    except Exception:
        vmem_cap = 64 * 2 ** 20                 # v7x-safe fallback
    vmem_limit = int(min(int(0.75 * vmem_cap),
                         max(32 * 2 ** 20, 2 * block_bytes + (4 << 20))))

    call = pl.pallas_call(
        _smplify_kp_kernel,
        out_shape=out_shape,
        grid_spec=pltpu.PrefetchScalarGridSpec(
            num_scalar_prefetch=0,
            grid=(nb,),
            in_specs=in_specs,
            out_specs=out_specs,
        ),
        compiler_params=pltpu.CompilerParams(
            dimension_semantics=("parallel",),           # tiles are independent
            vmem_limit_bytes=vmem_limit,
            allow_input_fusion=[False, True, False, False, False],  # fuse verts transpose
        ),
    )
    return call, dict(nb=nb, Jp=Jp, Vp=Vp, Cp=Cp)


def make_smplify_loss_fn(J_regressor, kpts2d, kpts3d, scales, Ks, Rs, Ts,
                         *, matmul_dtype=jnp.float32, frame_tile=None):
    """Hoists all fitting-invariant layout plumbing (done once) and returns
    loss_fn(vertices, full_pose, betas, pose_embedding, loss_weight_dict)."""
    f32 = jnp.float32
    J_regressor = jnp.asarray(J_regressor, f32)
    kpts3d = jnp.asarray(kpts3d, f32)
    kpts2d = jnp.asarray(kpts2d, f32)
    scales = jnp.asarray(scales, f32)
    Ks = jnp.asarray(Ks, f32)
    Rs = jnp.asarray(Rs, f32)
    Ts = jnp.asarray(Ts, f32)

    J, V = J_regressor.shape
    B, NV = scales.shape
    if B < 3:
        raise ValueError("smooth losses divide by (B - 2); need at least 3 frames")

    Vp = _round_up(V, _LANE)
    itemsize = np.dtype(matmul_dtype).itemsize
    if frame_tile is not None:
        if B % frame_tile != 0:
            raise ValueError("frame_tile must divide the number of frames")
        if frame_tile != B and frame_tile % _LANE != 0:
            raise ValueError("frame_tile must be a multiple of 128 (or equal to B)")
        TB = frame_tile
    else:
        TB = _pick_frame_tile(B, Vp, itemsize)
    nb = B // TB

    call, dims = _build_kernel_call(B, V, J, NV, TB, matmul_dtype)
    Jp, Cp = dims["Jp"], dims["Cp"]

    # ---- fitting-invariant layout plumbing: computed ONCE, reused every call ----
    jreg_p = jnp.pad(J_regressor, ((0, Jp - J), (0, Vp - V))).astype(matmul_dtype)

    xyz3 = kpts3d[..., :3]
    conf3 = kpts3d[..., 3] if kpts3d.shape[-1] > 3 else jnp.ones((B, J), f32)
    k3 = jnp.concatenate([xyz3, conf3[..., None]], axis=-1)                  # (B, J, 4)
    k3 = jnp.pad(jnp.transpose(k3, (2, 1, 0)), ((0, 0), (0, Jp - J), (0, 0)))  # (4, Jp, B)

    xy2 = kpts2d[..., :2]
    # reference: conf = kpts2d[..., -1:] only if it has > 3 channels, else 1
    conf2 = kpts2d[..., -1] if kpts2d.shape[-1] > 3 else jnp.ones((B, NV, J), f32)
    k2 = jnp.concatenate([xy2, conf2[..., None]], axis=-1)                   # (B, NV, J, 3)
    k2 = jnp.pad(jnp.transpose(k2, (3, 1, 2, 0)),
                 ((0, 0), (0, 0), (0, Jp - J), (0, 0)))                      # (3, NV, Jp, B)

    cam = jnp.concatenate([Ks.reshape(B, NV, 9), Rs.reshape(B, NV, 9),
                           Ts.reshape(B, NV, 3), scales.reshape(B, NV, 1)], axis=-1)
    cam = jnp.transpose(cam, (1, 2, 0)).reshape(NV * _CAM_CH, B)
    cam = jnp.pad(cam, ((0, Cp - NV * _CAM_CH), (0, 0)))                     # (Cp, B)

    @jax.jit
    def _terms(jreg_p, k3, k2, cam, vertices, full_pose, betas, pose_embedding):
        # per-iteration layout: only vertices change every SMPLify step
        verts = jnp.asarray(vertices, f32).reshape(nb, TB, V, 3)
        verts = jnp.transpose(verts, (0, 2, 3, 1)).reshape(nb, V, 3 * TB)
        verts = jnp.pad(verts, ((0, 0), (0, Vp - V), (0, 0))).astype(matmul_dtype)

        kp3d_parts, kp2d_parts, pred_j = call(jreg_p, verts, k3, k2, cam)
        kp3d = jnp.sum(kp3d_parts[:, 0, 0])
        kp2d = jnp.sum(kp2d_parts[:, 0, 0])

        # cheap O(B * 166) terms stay in plain XLA (keeps the kernel hot loop lean
        # and lets the frame-tile grid axis shard across TensorCores on v7x)
        pj = pred_j[:, :J, :]                                       # (3, J, B)
        d = pj[..., 1:-1] - 0.5 * (pj[..., :-2] + pj[..., 2:])
        smooth_kpts = jnp.sum(d * d) / (B - 2)

        pose = jnp.asarray(full_pose, f32)[:, :66]
        dp = pose[1:-1] - (pose[1:-1] + pose[:-2] + pose[2:]) / 3.0
        smooth_pose = jnp.sum(dp * dp) / (B - 2)                    # nViews = 1

        reg_pose = jnp.sum(jnp.asarray(pose_embedding, f32) ** 2)
        reg_shape = jnp.sum(jnp.asarray(betas, f32) ** 2)
        return jnp.stack([kp3d, kp2d, smooth_kpts, smooth_pose, reg_pose, reg_shape])

    def loss_fn(vertices, full_pose, betas, pose_embedding, loss_weight_dict):
        terms = _terms(jreg_p, k3, k2, cam, vertices, full_pose, betas, pose_embedding)
        loss_dict = {name: loss_weight_dict[name] * terms[idx]
                     for idx, name in enumerate(_LOSS_NAMES) if name in loss_weight_dict}
        total_loss = sum(loss_dict.values())
        return total_loss, loss_dict

    return loss_fn


def smplify_loss_forward(J_regressor, vertices, full_pose, betas, pose_embedding,
                         kpts2d, kpts3d, scales, Ks, Rs, Ts, loss_weight_dict,
                         *, matmul_dtype=jnp.float32, frame_tile=None):
    """One-shot convenience wrapper (builds + calls; prefer make_smplify_loss_fn
    inside an SMPLify optimization loop so the invariant plumbing runs once)."""
    loss_fn = make_smplify_loss_fn(J_regressor, kpts2d, kpts3d, scales, Ks, Rs, Ts,
                                   matmul_dtype=matmul_dtype, frame_tile=frame_tile)
    return loss_fn(vertices, full_pose, betas, pose_embedding, loss_weight_dict)


if __name__ == "__main__":
    key = jax.random.PRNGKey(0)
    # B = 256 frames so the lane-axis frame tiling (TB = 128, grid = 2) is exercised;
    # every other dimension stays small (V = 64 vertices, J = 16 joints, NV = 2 views).
    B, V, J, NV = 256, 64, 16, 2
    ks = jax.random.split(key, 10)

    J_regressor = jax.nn.softmax(jax.random.normal(ks[0], (J, V)), axis=-1)
    vertices = 0.1 * jax.random.normal(ks[1], (B, V, 3))
    full_pose = 0.2 * jax.random.normal(ks[2], (B, 165))        # SMPLX full pose
    betas = 0.5 * jax.random.normal(ks[3], (B, 11))             # num_betas = 11
    pose_embedding = 0.3 * jax.random.normal(ks[4], (B, 32))    # VPoser latent

    kpts3d = jnp.concatenate([0.1 * jax.random.normal(ks[5], (B, J, 3)),
                              jax.random.uniform(ks[6], (B, J, 1))], axis=-1)
    kpts2d = jnp.concatenate([100.0 * jax.random.uniform(ks[7], (B, NV, J, 2)),
                              jnp.ones((B, NV, J, 1))], axis=-1)
    scales = 0.5 + jax.random.uniform(ks[8], (B, NV))

    K = jnp.array([[500.0, 0.0, 128.0],
                   [0.0, 500.0, 128.0],
                   [0.0, 0.0, 1.0]], jnp.float32)
    Ks = jnp.broadcast_to(K, (B, NV, 3, 3))
    Rs = jnp.broadcast_to(jnp.eye(3, dtype=jnp.float32), (B, NV, 3, 3))
    Ts = (jnp.broadcast_to(jnp.array([0.0, 0.0, 5.0], jnp.float32), (B, NV, 3))
          + 0.01 * jax.random.normal(ks[9], (B, NV, 3)))

    loss_weight_dict = {"kp3d": 100.0, "kp2d": 1.0, "smooth_kpts": 10.0,
                        "smooth_pose": 10.0, "reg_pose": 0.1, "reg_shape": 0.5}

    # fitting-invariant operands prepared once; loss_fn is what the SMPLify loop calls
    loss_fn = make_smplify_loss_fn(J_regressor, kpts2d, kpts3d, scales, Ks, Rs, Ts)
    total, loss_dict = loss_fn(vertices, full_pose, betas, pose_embedding, loss_weight_dict)

    jax.block_until_ready(total)
    print("KERNEL_OK")
</pallas_src>

<mosaic_0001>
module attributes {stable_mosaic.version = 11 : i64} {
  func.func @_smplify_kp_kernel(%arg0: i32, %arg1: memref<16x128xf32, #tpu.memory_space<vmem>>, %arg2: memref<1x128x384xf32, #tpu.memory_space<vmem>>, %arg3: memref<4x16x128xf32, #tpu.memory_space<vmem>>, %arg4: memref<3x2x16x128xf32, #tpu.memory_space<vmem>>, %arg5: memref<48x128xf32, #tpu.memory_space<vmem>>, %arg6: memref<1x8x128xf32, #tpu.memory_space<vmem>>, %arg7: memref<1x8x128xf32, #tpu.memory_space<vmem>>, %arg8: memref<3x16x128xf32, #tpu.memory_space<vmem>>) attributes {dimension_semantics = [#tpu.dimension_semantics<parallel>], iteration_bounds = array<i64: 2>, scalar_prefetch = 0 : i64, scratch_operands = 0 : i64, tpu.core_type = #tpu.core_type<tc>, window_params = [{pipeline_mode = #tpu.pipeline_mode<synchronous>, transform_indices = @transform_0, window_bounds = array<i64: 16, 128>}, {transform_indices = @transform_1, window_bounds = array<i64: 1, 128, 384>}, {transform_indices = @transform_2, window_bounds = array<i64: 4, 16, 128>}, {transform_indices = @transform_3, window_bounds = array<i64: 3, 2, 16, 128>}, {transform_indices = @transform_4, window_bounds = array<i64: 48, 128>}, {transform_indices = @transform_5, window_bounds = array<i64: 1, 8, 128>}, {transform_indices = @transform_6, window_bounds = array<i64: 1, 8, 128>}, {transform_indices = @transform_7, window_bounds = array<i64: 3, 16, 128>}]} {
    %c0 = arith.constant 0 : index
    %c0_0 = arith.constant 0 : index
    %0 = vector.load %arg1[%c0, %c0_0] : memref<16x128xf32, #tpu.memory_space<vmem>>, vector<16x128xf32>
    %c0_1 = arith.constant 0 : index
    %c0_2 = arith.constant 0 : index
    %c0_3 = arith.constant 0 : index
    %1 = vector.load %arg2[%c0_1, %c0_2, %c0_3] : memref<1x128x384xf32, #tpu.memory_space<vmem>>, vector<1x128x384xf32>
    %2 = vector.shape_cast %1 : vector<1x128x384xf32> to vector<128x384xf32>
    %cst = arith.constant dense<0.000000e+00> : vector<16x384xf32>
    %3 = tpu.matmul %0, %2, %cst {dimension_numbers = #tpu.dot_dimension_numbers<[1], [0], [0], [1], [0, 0, 1, 1], [], []>} : vector<16x128xf32>, vector<128x384xf32>, vector<16x384xf32> -> vector<16x384xf32>
    %4 = vector.extract_strided_slice %3 {offsets = [0, 0], sizes = [16, 128], strides = [1, 1]} : vector<16x384xf32> to vector<16x128xf32>
    %5 = vector.extract_strided_slice %3 {offsets = [0, 128], sizes = [16, 128], strides = [1, 1]} : vector<16x384xf32> to vector<16x128xf32>
    %6 = vector.extract_strided_slice %3 {offsets = [0, 256], sizes = [16, 128], strides = [1, 1]} : vector<16x384xf32> to vector<16x128xf32>
    %c0_4 = arith.constant 0 : index
    %c0_5 = arith.constant 0 : index
    %c0_6 = arith.constant 0 : index
    %7 = vector.load %arg8[%c0_4, %c0_5, %c0_6] : memref<3x16x128xf32, #tpu.memory_space<vmem>>, vector<1x16x128xf32>
    %8 = vector.shape_cast %7 : vector<1x16x128xf32> to vector<16x128xf32>
    %9 = vector.shape_cast %4 : vector<16x128xf32> to vector<1x16x128xf32>
    tpu.vector_store %arg8[%c0_4, %c0_5, %c0_6], %9 {strides = array<i32>} : memref<3x16x128xf32, #tpu.memory_space<vmem>>, vector<1x16x128xf32>,
    %c1 = arith.constant 1 : index
    %c0_7 = arith.constant 0 : index
    %c0_8 = arith.constant 0 : index
    %10 = vector.load %arg8[%c1, %c0_7, %c0_8] : memref<3x16x128xf32, #tpu.memory_space<vmem>>, vector<1x16x128xf32>
    %11 = vector.shape_cast %10 : vector<1x16x128xf32> to vector<16x128xf32>
    %12 = vector.shape_cast %5 : vector<16x128xf32> to vector<1x16x128xf32>
    tpu.vector_store %arg8[%c1, %c0_7, %c0_8], %12 {strides = array<i32>} : memref<3x16x128xf32, #tpu.memory_space<vmem>>, vector<1x16x128xf32>,
    %c2 = arith.constant 2 : index
    %c0_9 = arith.constant 0 : index
    %c0_10 = arith.constant 0 : index
    %13 = vector.load %arg8[%c2, %c0_9, %c0_10] : memref<3x16x128xf32, #tpu.memory_space<vmem>>, vector<1x16x128xf32>
    %14 = vector.shape_cast %13 : vector<1x16x128xf32> to vector<16x128xf32>
    %15 = vector.shape_cast %6 : vector<16x128xf32> to vector<1x16x128xf32>
    tpu.vector_store %arg8[%c2, %c0_9, %c0_10], %15 {strides = array<i32>} : memref<3x16x128xf32, #tpu.memory_space<vmem>>, vector<1x16x128xf32>,
    %c3 = arith.constant 3 : index
    %c0_11 = arith.constant 0 : index
    %c0_12 = arith.constant 0 : index
    %16 = vector.load %arg3[%c3, %c0_11, %c0_12] : memref<4x16x128xf32, #tpu.memory_space<vmem>>, vector<1x16x128xf32>
    %17 = vector.shape_cast %16 : vector<1x16x128xf32> to vector<16x128xf32>
    %c0_13 = arith.constant 0 : index
    %c0_14 = arith.constant 0 : index
    %c0_15 = arith.constant 0 : index
    %18 = vector.load %arg3[%c0_13, %c0_14, %c0_15] : memref<4x16x128xf32, #tpu.memory_space<vmem>>, vector<1x16x128xf32>
    %19 = vector.shape_cast %18 : vector<1x16x128xf32> to vector<16x128xf32>
    %20 = arith.subf %4, %19 : vector<16x128xf32>
    %21 = arith.mulf %20, %17 : vector<16x128xf32>
    %c1_16 = arith.constant 1 : index
    %c0_17 = arith.constant 0 : index
    %c0_18 = arith.constant 0 : index
    %22 = vector.load %arg3[%c1_16, %c0_17, %c0_18] : memref<4x16x128xf32, #tpu.memory_space<vmem>>, vector<1x16x128xf32>
    %23 = vector.shape_cast %22 : vector<1x16x128xf32> to vector<16x128xf32>
    %24 = arith.subf %5, %23 : vector<16x128xf32>
    %25 = arith.mulf %24, %17 : vector<16x128xf32>
    %c2_19 = arith.constant 2 : index
    %c0_20 = arith.constant 0 : index
    %c0_21 = arith.constant 0 : index
    %26 = vector.load %arg3[%c2_19, %c0_20, %c0_21] : memref<4x16x128xf32, #tpu.memory_space<vmem>>, vector<1x16x128xf32>
    %27 = vector.shape_cast %26 : vector<1x16x128xf32> to vector<16x128xf32>
    %28 = arith.subf %6, %27 : vector<16x128xf32>
    %29 = arith.mulf %28, %17 : vector<16x128xf32>
    %30 = arith.mulf %21, %21 : vector<16x128xf32>
    %31 = arith.mulf %25, %25 : vector<16x128xf32>
    %32 = arith.addf %30, %31 : vector<16x128xf32>
    %33 = arith.mulf %29, %29 : vector<16x128xf32>
    %34 = arith.addf %32, %33 : vector<16x128xf32>
    %35 = vector.shape_cast %34 : vector<16x128xf32> to vector<1x16x128xf32>
    %cst_22 = arith.constant dense<0.000000e+00> : vector<1xf32>
    %36 = vector.multi_reduction <add>, %35, %cst_22 [1, 2] : vector<1x16x128xf32> to vector<1xf32>
    %37 = vector.shape_cast %36 : vector<1xf32> to vector<1x1x1xf32>
    %38 = vector.extract %37[0, 0, 0] : f32 from vector<1x1x1xf32>
    %39 = vector.broadcast %38 : f32 to vector<1x8x128xf32>
    %c0_23 = arith.constant 0 : index
    %c0_24 = arith.constant 0 : index
    %c0_25 = arith.constant 0 : index
    %40 = vector.load %arg6[%c0_23, %c0_24, %c0_25] : memref<1x8x128xf32, #tpu.memory_space<vmem>>, vector<1x8x128xf32>
    tpu.vector_store %arg6[%c0_23, %c0_24, %c0_25], %39 {strides = array<i32>} : memref<1x8x128xf32, #tpu.memory_space<vmem>>, vector<1x8x128xf32>,
    %cst_26 = arith.constant 0.000000e+00 : f32
    %41 = vector.broadcast %cst_26 : f32 to vector<16x128xf32>
    %c9 = arith.constant 9 : index
    %c0_27 = arith.constant 0 : index
    %42 = vector.load %arg5[%c9, %c0_27] : memref<48x128xf32, #tpu.memory_space<vmem>>, vector<1x128xf32>
    %43 = vector.broadcast %42 : vector<1x128xf32> to vector<16x128xf32>
    %44 = arith.mulf %43, %4 : vector<16x128xf32>
    %c10 = arith.constant 10 : index
    %c0_28 = arith.constant 0 : index
    %45 = vector.load %arg5[%c10, %c0_28] : memref<48x128xf32, #tpu.memory_space<vmem>>, vector<1x128xf32>
    %46 = vector.broadcast %45 : vector<1x128xf32> to vector<16x128xf32>
    %47 = arith.mulf %46, %5 : vector<16x128xf32>
    %48 = arith.addf %44, %47 : vector<16x128xf32>
    %c11 = arith.constant 11 : index
    %c0_29 = arith.constant 0 : index
    %49 = vector.load %arg5[%c11, %c0_29] : memref<48x128xf32, #tpu.memory_space<vmem>>, vector<1x128xf32>
    %50 = vector.broadcast %49 : vector<1x128xf32> to vector<16x128xf32>
    %51 = arith.mulf %50, %6 : vector<16x128xf32>
    %52 = arith.addf %48, %51 : vector<16x128xf32>
    %c18 = arith.constant 18 : index
    %c0_30 = arith.constant 0 : index
    %53 = vector.load %arg5[%c18, %c0_30] : memref<48x128xf32, #tpu.memory_space<vmem>>, vector<1x128xf32>
    %54 = vector.broadcast %53 : vector<1x128xf32> to vector<16x128xf32>
    %55 = arith.addf %52, %54 : vector<16x128xf32>
    %c12 = arith.constant 12 : index
    %c0_31 = arith.constant 0 : index
    %56 = vector.load %arg5[%c12, %c0_31] : memref<48x128xf32, #tpu.memory_space<vmem>>, vector<1x128xf32>
    %57 = vector.broadcast %56 : vector<1x128xf32> to vector<16x128xf32>
    %58 = arith.mulf %57, %4 : vector<16x128xf32>
    %c13 = arith.constant 13 : index
    %c0_32 = arith.constant 0 : index
    %59 = vector.load %arg5[%c13, %c0_32] : memref<48x128xf32, #tpu.memory_space<vmem>>, vector<1x128xf32>
    %60 = vector.broadcast %59 : vector<1x128xf32> to vector<16x128xf32>
    %61 = arith.mulf %60, %5 : vector<16x128xf32>
    %62 = arith.addf %58, %61 : vector<16x128xf32>
    %c14 = arith.constant 14 : index
    %c0_33 = arith.constant 0 : index
    %63 = vector.load %arg5[%c14, %c0_33] : memref<48x128xf32, #tpu.memory_space<vmem>>, vector<1x128xf32>
    %64 = vector.broadcast %63 : vector<1x128xf32> to vector<16x128xf32>
    %65 = arith.mulf %64, %6 : vector<16x128xf32>
    %66 = arith.addf %62, %65 : vector<16x128xf32>
    %c19 = arith.constant 19 : index
    %c0_34 = arith.constant 0 : index
    %67 = vector.load %arg5[%c19, %c0_34] : memref<48x128xf32, #tpu.memory_space<vmem>>, vector<1x128xf32>
    %68 = vector.broadcast %67 : vector<1x128xf32> to vector<16x128xf32>
    %69 = arith.addf %66, %68 : vector<16x128xf32>
    %c15 = arith.constant 15 : index
    %c0_35 = arith.constant 0 : index
    %70 = vector.load %arg5[%c15, %c0_35] : memref<48x128xf32, #tpu.memory_space<vmem>>, vector<1x128xf32>
    %71 = vector.broadcast %70 : vector<1x128xf32> to vector<16x128xf32>
    %72 = arith.mulf %71, %4 : vector<16x128xf32>
    %c16 = arith.constant 16 : index
    %c0_36 = arith.constant 0 : index
    %73 = vector.load %arg5[%c16, %c0_36] : memref<48x128xf32, #tpu.memory_space<vmem>>, vector<1x128xf32>
    %74 = vector.broadcast %73 : vector<1x128xf32> to vector<16x128xf32>
    %75 = arith.mulf %74, %5 : vector<16x128xf32>
    %76 = arith.addf %72, %75 : vector<16x128xf32>
    %c17 = arith.constant 17 : index
    %c0_37 = arith.constant 0 : index
    %77 = vector.load %arg5[%c17, %c0_37] : memref<48x128xf32, #tpu.memory_space<vmem>>, vector<1x128xf32>
    %78 = vector.broadcast %77 : vector<1x128xf32> to vector<16x128xf32>
    %79 = arith.mulf %78, %6 : vector<16x128xf32>
    %80 = arith.addf %76, %79 : vector<16x128xf32>
    %c20 = arith.constant 20 : index
    %c0_38 = arith.constant 0 : index
    %81 = vector.load %arg5[%c20, %c0_38] : memref<48x128xf32, #tpu.memory_space<vmem>>, vector<1x128xf32>
    %82 = vector.broadcast %81 : vector<1x128xf32> to vector<16x128xf32>
    %83 = arith.addf %80, %82 : vector<16x128xf32>
    %84 = arith.divf %55, %83 : vector<16x128xf32>
    %85 = arith.divf %69, %83 : vector<16x128xf32>
    %c0_39 = arith.constant 0 : index
    %c0_40 = arith.constant 0 : index
    %86 = vector.load %arg5[%c0_39, %c0_40] : memref<48x128xf32, #tpu.memory_space<vmem>>, vector<1x128xf32>
    %87 = vector.broadcast %86 : vector<1x128xf32> to vector<16x128xf32>
    %88 = arith.mulf %87, %84 : vector<16x128xf32>
    %c1_41 = arith.constant 1 : index
    %c0_42 = arith.constant 0 : index
    %89 = vector.load %arg5[%c1_41, %c0_42] : memref<48x128xf32, #tpu.memory_space<vmem>>, vector<1x128xf32>
    %90 = vector.broadcast %89 : vector<1x128xf32> to vector<16x128xf32>
    %91 = arith.mulf %90, %85 : vector<16x128xf32>
    %92 = arith.addf %88, %91 : vector<16x128xf32>
    %c2_43 = arith.constant 2 : index
    %c0_44 = arith.constant 0 : index
    %93 = vector.load %arg5[%c2_43, %c0_44] : memref<48x128xf32, #tpu.memory_space<vmem>>, vector<1x128xf32>
    %94 = vector.broadcast %93 : vector<1x128xf32> to vector<16x128xf32>
    %95 = arith.addf %92, %94 : vector<16x128xf32>
    %c3_45 = arith.constant 3 : index
    %c0_46 = arith.constant 0 : index
    %96 = vector.load %arg5[%c3_45, %c0_46] : memref<48x128xf32, #tpu.memory_space<vmem>>, vector<1x128xf32>
    %97 = vector.broadcast %96 : vector<1x128xf32> to vector<16x128xf32>
    %98 = arith.mulf %97, %84 : vector<16x128xf32>
    %c4 = arith.constant 4 : index
    %c0_47 = arith.constant 0 : index
    %99 = vector.load %arg5[%c4, %c0_47] : memref<48x128xf32, #tpu.memory_space<vmem>>, vector<1x128xf32>
    %100 = vector.broadcast %99 : vector<1x128xf32> to vector<16x128xf32>
    %101 = arith.mulf %100, %85 : vector<16x128xf32>
    %102 = arith.addf %98, %101 : vector<16x128xf32>
    %c5 = arith.constant 5 : index
    %c0_48 = arith.constant 0 : index
    %103 = vector.load %arg5[%c5, %c0_48] : memref<48x128xf32, #tpu.memory_space<vmem>>, vector<1x128xf32>
    %104 = vector.broadcast %103 : vector<1x128xf32> to vector<16x128xf32>
    %105 = arith.addf %102, %104 : vector<16x128xf32>
    %c21 = arith.constant 21 : index
    %c0_49 = arith.constant 0 : index
    %106 = vector.load %arg5[%c21, %c0_49] : memref<48x128xf32, #tpu.memory_space<vmem>>, vector<1x128xf32>
    %cst_50 = arith.constant 1.000000e-03 : f32
    %107 = vector.broadcast %cst_50 : f32 to vector<1x128xf32>
    %108 = arith.addf %107, %106 : vector<1x128xf32>
    %cst_51 = arith.constant 2.000000e+02 : f32
    %109 = vector.broadcast %cst_51 : f32 to vector<1x128xf32>
    %110 = arith.mulf %108, %109 : vector<1x128xf32>
    %cst_52 = arith.constant 1.000000e+00 : f32
    %111 = vector.broadcast %cst_52 : f32 to vector<1x128xf32>
    %112 = arith.divf %111, %110 : vector<1x128xf32>
    %c2_53 = arith.constant 2 : index
    %c0_54 = arith.constant 0 : index
    %c0_55 = arith.constant 0 : index
    %c0_56 = arith.constant 0 : index
    %113 = vector.load %arg4[%c2_53, %c0_54, %c0_55, %c0_56] : memref<3x2x16x128xf32, #tpu.memory_space<vmem>>, vector<1x1x16x128xf32>
    %114 = vector.shape_cast %113 : vector<1x1x16x128xf32> to vector<16x128xf32>
    %c0_57 = arith.constant 0 : index
    %c0_58 = arith.constant 0 : index
    %c0_59 = arith.constant 0 : index
    %c0_60 = arith.constant 0 : index
    %115 = vector.load %arg4[%c0_57, %c0_58, %c0_59, %c0_60] : memref<3x2x16x128xf32, #tpu.memory_space<vmem>>, vector<1x1x16x128xf32>
    %116 = vector.shape_cast %115 : vector<1x1x16x128xf32> to vector<16x128xf32>
    %117 = arith.subf %95, %116 : vector<16x128xf32>
    %118 = arith.mulf %117, %114 : vector<16x128xf32>
    %119 = vector.broadcast %112 : vector<1x128xf32> to vector<16x128xf32>
    %120 = arith.mulf %118, %119 : vector<16x128xf32>
    %c1_61 = arith.constant 1 : index
    %c0_62 = arith.constant 0 : index
    %c0_63 = arith.constant 0 : index
    %c0_64 = arith.constant 0 : index
    %121 = vector.load %arg4[%c1_61, %c0_62, %c0_63, %c0_64] : memref<3x2x16x128xf32, #tpu.memory_space<vmem>>, vector<1x1x16x128xf32>
    %122 = vector.shape_cast %121 : vector<1x1x16x128xf32> to vector<16x128xf32>
    %123 = arith.subf %105, %122 : vector<16x128xf32>
    %124 = arith.mulf %123, %114 : vector<16x128xf32>
    %125 = vector.broadcast %112 : vector<1x128xf32> to vector<16x128xf32>
    %126 = arith.mulf %124, %125 : vector<16x128xf32>
    %127 = arith.mulf %120, %120 : vector<16x128xf32>
    %128 = arith.mulf %126, %126 : vector<16x128xf32>
    %cst_65 = arith.constant 2.000000e+02 : f32
    %129 = vector.broadcast %cst_65 : f32 to vector<16x128xf32>
    %130 = arith.addf %129, %127 : vector<16x128xf32>
    %131 = arith.divf %127, %130 : vector<16x128xf32>
    %132 = arith.addf %41, %131 : vector<16x128xf32>
    %cst_66 = arith.constant 2.000000e+02 : f32
    %133 = vector.broadcast %cst_66 : f32 to vector<16x128xf32>
    %134 = arith.addf %133, %128 : vector<16x128xf32>
    %135 = arith.divf %128, %134 : vector<16x128xf32>
    %136 = arith.addf %132, %135 : vector<16x128xf32>
    %c31 = arith.constant 31 : index
    %c0_67 = arith.constant 0 : index
    %137 = vector.load %arg5[%c31, %c0_67] : memref<48x128xf32, #tpu.memory_space<vmem>>, vector<1x128xf32>
    %138 = vector.broadcast %137 : vector<1x128xf32> to vector<16x128xf32>
    %139 = arith.mulf %138, %4 : vector<16x128xf32>
    %c32 = arith.constant 32 : index
    %c0_68 = arith.constant 0 : index
    %140 = vector.load %arg5[%c32, %c0_68] : memref<48x128xf32, #tpu.memory_space<vmem>>, vector<1x128xf32>
    %141 = vector.broadcast %140 : vector<1x128xf32> to vector<16x128xf32>
    %142 = arith.mulf %141, %5 : vector<16x128xf32>
    %143 = arith.addf %139, %142 : vector<16x128xf32>
    %c33 = arith.constant 33 : index
    %c0_69 = arith.constant 0 : index
    %144 = vector.load %arg5[%c33, %c0_69] : memref<48x128xf32, #tpu.memory_space<vmem>>, vector<1x128xf32>
    %145 = vector.broadcast %144 : vector<1x128xf32> to vector<16x128xf32>
    %146 = arith.mulf %145, %6 : vector<16x128xf32>
    %147 = arith.addf %143, %146 : vector<16x128xf32>
    %c40 = arith.constant 40 : index
    %c0_70 = arith.constant 0 : index
    %148 = vector.load %arg5[%c40, %c0_70] : memref<48x128xf32, #tpu.memory_space<vmem>>, vector<1x128xf32>
    %149 = vector.broadcast %148 : vector<1x128xf32> to vector<16x128xf32>
    %150 = arith.addf %147, %149 : vector<16x128xf32>
    %c34 = arith.constant 34 : index
    %c0_71 = arith.constant 0 : index
    %151 = vector.load %arg5[%c34, %c0_71] : memref<48x128xf32, #tpu.memory_space<vmem>>, vector<1x128xf32>
    %152 = vector.broadcast %151 : vector<1x128xf32> to vector<16x128xf32>
    %153 = arith.mulf %152, %4 : vector<16x128xf32>
    %c35 = arith.constant 35 : index
    %c0_72 = arith.constant 0 : index
    %154 = vector.load %arg5[%c35, %c0_72] : memref<48x128xf32, #tpu.memory_space<vmem>>, vector<1x128xf32>
    %155 = vector.broadcast %154 : vector<1x128xf32> to vector<16x128xf32>
    %156 = arith.mulf %155, %5 : vector<16x128xf32>
    %157 = arith.addf %153, %156 : vector<16x128xf32>
    %c36 = arith.constant 36 : index
    %c0_73 = arith.constant 0 : index
    %158 = vector.load %arg5[%c36, %c0_73] : memref<48x128xf32, #tpu.memory_space<vmem>>, vector<1x128xf32>
    %159 = vector.broadcast %158 : vector<1x128xf32> to vector<16x128xf32>
    %160 = arith.mulf %159, %6 : vector<16x128xf32>
    %161 = arith.addf %157, %160 : vector<16x128xf32>
    %c41 = arith.constant 41 : index
    %c0_74 = arith.constant 0 : index
    %162 = vector.load %arg5[%c41, %c0_74] : memref<48x128xf32, #tpu.memory_space<vmem>>, vector<1x128xf32>
    %163 = vector.broadcast %162 : vector<1x128xf32> to vector<16x128xf32>
    %164 = arith.addf %161, %163 : vector<16x128xf32>
    %c37 = arith.constant 37 : index
    %c0_75 = arith.constant 0 : index
    %165 = vector.load %arg5[%c37, %c0_75] : memref<48x128xf32, #tpu.memory_space<vmem>>, vector<1x128xf32>
    %166 = vector.broadcast %165 : vector<1x128xf32> to vector<16x128xf32>
    %167 = arith.mulf %166, %4 : vector<16x128xf32>
    %c38 = arith.constant 38 : index
    %c0_76 = arith.constant 0 : index
    %168 = vector.load %arg5[%c38, %c0_76] : memref<48x128xf32, #tpu.memory_space<vmem>>, vector<1x128xf32>
    %169 = vector.broadcast %168 : vector<1x128xf32> to vector<16x128xf32>
    %170 = arith.mulf %169, %5 : vector<16x128xf32>
    %171 = arith.addf %167, %170 : vector<16x128xf32>
    %c39 = arith.constant 39 : index
    %c0_77 = arith.constant 0 : index
    %172 = vector.load %arg5[%c39, %c0_77] : memref<48x128xf32, #tpu.memory_space<vmem>>, vector<1x128xf32>
    %173 = vector.broadcast %172 : vector<1x128xf32> to vector<16x128xf32>
    %174 = arith.mulf %173, %6 : vector<16x128xf32>
    %175 = arith.addf %171, %174 : vector<16x128xf32>
    %c42 = arith.constant 42 : index
    %c0_78 = arith.constant 0 : index
    %176 = vector.load %arg5[%c42, %c0_78] : memref<48x128xf32, #tpu.memory_space<vmem>>, vector<1x128xf32>
    %177 = vector.broadcast %176 : vector<1x128xf32> to vector<16x128xf32>
    %178 = arith.addf %175, %177 : vector<16x128xf32>
    %179 = arith.divf %150, %178 : vector<16x128xf32>
    %180 = arith.divf %164, %178 : vector<16x128xf32>
    %c22 = arith.constant 22 : index
    %c0_79 = arith.constant 0 : index
    %181 = vector.load %arg5[%c22, %c0_79] : memref<48x128xf32, #tpu.memory_space<vmem>>, vector<1x128xf32>
    %182 = vector.broadcast %181 : vector<1x128xf32> to vector<16x128xf32>
    %183 = arith.mulf %182, %179 : vector<16x128xf32>
    %c23 = arith.constant 23 : index
    %c0_80 = arith.constant 0 : index
    %184 = vector.load %arg5[%c23, %c0_80] : memref<48x128xf32, #tpu.memory_space<vmem>>, vector<1x128xf32>
    %185 = vector.broadcast %184 : vector<1x128xf32> to vector<16x128xf32>
    %186 = arith.mulf %185, %180 : vector<16x128xf32>
    %187 = arith.addf %183, %186 : vector<16x128xf32>
    %c24 = arith.constant 24 : index
    %c0_81 = arith.constant 0 : index
    %188 = vector.load %arg5[%c24, %c0_81] : memref<48x128xf32, #tpu.memory_space<vmem>>, vector<1x128xf32>
    %189 = vector.broadcast %188 : vector<1x128xf32> to vector<16x128xf32>
    %190 = arith.addf %187, %189 : vector<16x128xf32>
    %c25 = arith.constant 25 : index
    %c0_82 = arith.constant 0 : index
    %191 = vector.load %arg5[%c25, %c0_82] : memref<48x128xf32, #tpu.memory_space<vmem>>, vector<1x128xf32>
    %192 = vector.broadcast %191 : vector<1x128xf32> to vector<16x128xf32>
    %193 = arith.mulf %192, %179 : vector<16x128xf32>
    %c26 = arith.constant 26 : index
    %c0_83 = arith.constant 0 : index
    %194 = vector.load %arg5[%c26, %c0_83] : memref<48x128xf32, #tpu.memory_space<vmem>>, vector<1x128xf32>
    %195 = vector.broadcast %194 : vector<1x128xf32> to vector<16x128xf32>
    %196 = arith.mulf %195, %180 : vector<16x128xf32>
    %197 = arith.addf %193, %196 : vector<16x128xf32>
    %c27 = arith.constant 27 : index
    %c0_84 = arith.constant 0 : index
    %198 = vector.load %arg5[%c27, %c0_84] : memref<48x128xf32, #tpu.memory_space<vmem>>, vector<1x128xf32>
    %199 = vector.broadcast %198 : vector<1x128xf32> to vector<16x128xf32>
    %200 = arith.addf %197, %199 : vector<16x128xf32>
    %c43 = arith.constant 43 : index
    %c0_85 = arith.constant 0 : index
    %201 = vector.load %arg5[%c43, %c0_85] : memref<48x128xf32, #tpu.memory_space<vmem>>, vector<1x128xf32>
    %cst_86 = arith.constant 1.000000e-03 : f32
    %202 = vector.broadcast %cst_86 : f32 to vector<1x128xf32>
    %203 = arith.addf %202, %201 : vector<1x128xf32>
    %cst_87 = arith.constant 2.000000e+02 : f32
    %204 = vector.broadcast %cst_87 : f32 to vector<1x128xf32>
    %205 = arith.mulf %203, %204 : vector<1x128xf32>
    %cst_88 = arith.constant 1.000000e+00 : f32
    %206 = vector.broadcast %cst_88 : f32 to vector<1x128xf32>
    %207 = arith.divf %206, %205 : vector<1x128xf32>
    %c2_89 = arith.constant 2 : index
    %c1_90 = arith.constant 1 : index
    %c0_91 = arith.constant 0 : index
    %c0_92 = arith.constant 0 : index
    %208 = vector.load %arg4[%c2_89, %c1_90, %c0_91, %c0_92] : memref<3x2x16x128xf32, #tpu.memory_space<vmem>>, vector<1x1x16x128xf32>
    %209 = vector.shape_cast %208 : vector<1x1x16x128xf32> to vector<16x128xf32>
    %c0_93 = arith.constant 0 : index
    %c1_94 = arith.constant 1 : index
    %c0_95 = arith.constant 0 : index
    %c0_96 = arith.constant 0 : index
    %210 = vector.load %arg4[%c0_93, %c1_94, %c0_95, %c0_96] : memref<3x2x16x128xf32, #tpu.memory_space<vmem>>, vector<1x1x16x128xf32>
    %211 = vector.shape_cast %210 : vector<1x1x16x128xf32> to vector<16x128xf32>
    %212 = arith.subf %190, %211 : vector<16x128xf32>
    %213 = arith.mulf %212, %209 : vector<16x128xf32>
    %214 = vector.broadcast %207 : vector<1x128xf32> to vector<16x128xf32>
    %215 = arith.mulf %213, %214 : vector<16x128xf32>
    %c1_97 = arith.constant 1 : index
    %c1_98 = arith.constant 1 : index
    %c0_99 = arith.constant 0 : index
    %c0_100 = arith.constant 0 : index
    %216 = vector.load %arg4[%c1_97, %c1_98, %c0_99, %c0_100] : memref<3x2x16x128xf32, #tpu.memory_space<vmem>>, vector<1x1x16x128xf32>
    %217 = vector.shape_cast %216 : vector<1x1x16x128xf32> to vector<16x128xf32>
    %218 = arith.subf %200, %217 : vector<16x128xf32>
    %219 = arith.mulf %218, %209 : vector<16x128xf32>
    %220 = vector.broadcast %207 : vector<1x128xf32> to vector<16x128xf32>
    %221 = arith.mulf %219, %220 : vector<16x128xf32>
    %222 = arith.mulf %215, %215 : vector<16x128xf32>
    %223 = arith.mulf %221, %221 : vector<16x128xf32>
    %cst_101 = arith.constant 2.000000e+02 : f32
    %224 = vector.broadcast %cst_101 : f32 to vector<16x128xf32>
    %225 = arith.addf %224, %222 : vector<16x128xf32>
    %226 = arith.divf %222, %225 : vector<16x128xf32>
    %227 = arith.addf %136, %226 : vector<16x128xf32>
    %cst_102 = arith.constant 2.000000e+02 : f32
    %228 = vector.broadcast %cst_102 : f32 to vector<16x128xf32>
    %229 = arith.addf %228, %223 : vector<16x128xf32>
    %230 = arith.divf %223, %229 : vector<16x128xf32>
    %231 = arith.addf %227, %230 : vector<16x128xf32>
    %232 = vector.shape_cast %231 : vector<16x128xf32> to vector<1x16x128xf32>
    %cst_103 = arith.constant dense<0.000000e+00> : vector<1xf32>
    %233 = vector.multi_reduction <add>, %232, %cst_103 [1, 2] : vector<1x16x128xf32> to vector<1xf32>
    %234 = vector.shape_cast %233 : vector<1xf32> to vector<1x1x1xf32>
    %235 = vector.extract %234[0, 0, 0] : f32 from vector<1x1x1xf32>
    %cst_104 = arith.constant 2.000000e+02 : f32
    %236 = arith.mulf %cst_104, %235 : f32
    %237 = vector.broadcast %236 : f32 to vector<1x8x128xf32>
    %c0_105 = arith.constant 0 : index
    %c0_106 = arith.constant 0 : index
    %c0_107 = arith.constant 0 : index
    %238 = vector.load %arg7[%c0_105, %c0_106, %c0_107] : memref<1x8x128xf32, #tpu.memory_space<vmem>>, vector<1x8x128xf32>
    tpu.vector_store %arg7[%c0_105, %c0_106, %c0_107], %237 {strides = array<i32>} : memref<1x8x128xf32, #tpu.memory_space<vmem>>, vector<1x8x128xf32>,
    return
  }
  func.func @transform_0(%arg0: i32) -> (i32, i32) {
    %c0_i32 = arith.constant 0 : i32
    %c0_i32_0 = arith.constant 0 : i32
    %c0_i32_1 = arith.constant 0 : i32
    return %c0_i32, %c0_i32_0 : i32, i32
  }
  func.func @transform_1(%arg0: i32) -> (i32, i32, i32) {
    %c0_i32 = arith.constant 0 : i32
    %c0_i32_0 = arith.constant 0 : i32
    %c0_i32_1 = arith.constant 0 : i32
    return %arg0, %c0_i32, %c0_i32_0 : i32, i32, i32
  }
  func.func @transform_2(%arg0: i32) -> (i32, i32, i32) {
    %c0_i32 = arith.constant 0 : i32
    %c0_i32_0 = arith.constant 0 : i32
    %c0_i32_1 = arith.constant 0 : i32
    return %c0_i32, %c0_i32_0, %arg0 : i32, i32, i32
  }
  func.func @transform_3(%arg0: i32) -> (i32, i32, i32, i32) {
    %c0_i32 = arith.constant 0 : i32
    %c0_i32_0 = arith.constant 0 : i32
    %c0_i32_1 = arith.constant 0 : i32
    %c0_i32_2 = arith.constant 0 : i32
    return %c0_i32, %c0_i32_0, %c0_i32_1, %arg0 : i32, i32, i32, i32
  }
  func.func @transform_4(%arg0: i32) -> (i32, i32) {
    %c0_i32 = arith.constant 0 : i32
    %c0_i32_0 = arith.constant 0 : i32
    return %c0_i32, %arg0 : i32, i32
  }
  func.func @transform_5(%arg0: i32) -> (i32, i32, i32) {
    %c0_i32 = arith.constant 0 : i32
    %c0_i32_0 = arith.constant 0 : i32
    %c0_i32_1 = arith.constant 0 : i32
    return %arg0, %c0_i32, %c0_i32_0 : i32, i32, i32
  }
  func.func @transform_6(%arg0: i32) -> (i32, i32, i32) {
    %c0_i32 = arith.constant 0 : i32
    %c0_i32_0 = arith.constant 0 : i32
    %c0_i32_1 = arith.constant 0 : i32
    return %arg0, %c0_i32, %c0_i32_0 : i32, i32, i32
  }
  func.func @transform_7(%arg0: i32) -> (i32, i32, i32) {
    %c0_i32 = arith.constant 0 : i32
    %c0_i32_0 = arith.constant 0 : i32
    %c0_i32_1 = arith.constant 0 : i32
    return %c0_i32, %c0_i32_0, %arg0 : i32, i32, i32
  }
}

</mosaic_0001>

<bundles_post_ra>
// kernel: _terms.2
= control target key start
LH: loop header
LB: loop body
LE: loop exit
PB: predicated region body
PF: predicated region fallthrough
CT: control target
= control target key end

     0   :  { %s2302_s0 = inlined_call_operand.vmem [shape: f32[16,128], index: 0, kind: input, shape index: {}]   ;;  %s2303_s1 = inlined_call_operand.vmem [shape: f32[4,16,256], index: 1, kind: input, shape index: {}]   ;;  %s2304_s2 = inlined_call_operand.vmem [shape: f32[3,2,16,256], index: 2, kind: input, shape index: {}]   ;;  %s2305_s3 = inlined_call_operand.vmem [shape: f32[48,256], index: 3, kind: input, shape index: {}]   ;;  %s2306_s4 = inlined_call_operand.vmem [shape: f32[2,64,384], index: 4, kind: input, shape index: {}]   ;;  %s2307_s5 = inlined_call_operand.<no memory space> [shape: f32[], index: 5, kind: input, shape index: {}]   ;;  %s2308_s6 = inlined_call_operand.vmem [shape: f32[2,8,128], index: 6, kind: output, shape index: {0}]   ;;  %s2309_s7 = inlined_call_operand.vmem [shape: f32[2,8,128], index: 7, kind: output, shape index: {1}]   ;;  %s2310_s8 = inlined_call_operand.vmem [shape: f32[3,16,256], index: 8, kind: output, shape index: {2}]  }
   0x1   :  { %v14_v0 = vstv %s2307_s5 }
   0x2   :  { %s1977_s29 = smov 0   ;;  %s1979_s30 = smov 0  }
   0x3   :  { %s1981_s9 = smov 0  }
   0x4 LB: > { %s1993_s10 = sadd.s32 4294967295, %s1926_s9   ;;  %s1996_s11 = sadd.s32 1, %s1926_s9   ;;  %s1926_s9 = sphi %s1981_s9, %s2315_s9   ;;  %s1922_s30 = sphi %s1979_s30, %s2314_s30   ;;  %s1918_s29 = sphi %s1977_s29, %s2313_s29  }
   0x5   : > { %s71_s12 = ssub.s32 %s1926_s9, %s1996_s11  ;;  %s74_s13 = sadd.s32 1, %s1922_s30 }
   0x6   : > { %p72_p0 = scmp.eq.s32.totalorder %s71_s12, 0  ;;  %p81_p1 = scmp.ne.s32.totalorder %s1922_s30, %s1918_s29 }
   0x7   : > { %p82_p2 = scmp.eq.s32.totalorder %s1926_s9, 0  ;;  %p215_p3 = scmp.eq.s32.totalorder %s1993_s10, 1 }
   0x8   : > { %s2006_s14 = scalar_select %p72_p0, %s1922_s30, %s74_s13  }
   0x9   : > { %p2008_p4 = por %p82_p2, %p81_p1  ;;  %p2012_p5 = por %p215_p3, %p81_p1 }
   0xa   : > { %p1633_p6 = scmp.ge.s32.totalorder %s1926_s9, 2 }
   0xc   : > { %240 = sbr.rel (%p1633_p6) target bundleno = 44 (0x2c), region = 20 }
  0x13   : > { %251 = sbr.rel (!%p2008_p4) target bundleno = 27 (0x1b), region = 28  ;;  %s253_s17 = sand.u32 (%p2008_p4), 1, %s1922_s30  }
  0x14   : > { %s1635_s18 = sshll.u32 (%p2008_p4), %s1926_s9, 3  ;;  %s1634_s19 = sshll.u32 (%p2008_p4), %s253_s17, 6 }
  0x15   : > { %s257_s22 = scalar_lea.vmem (%p2008_p4), %s2303_s1, %s1635_s18  ;;  %s255_s23 = scalar_lea.vmem (%p2008_p4), [#allocation7], %s1634_s19 }
  0x16   : > { %v299_v1 = vld [vmem:[%s257_s22] sm:$0xff] (%p2008_p4)  ;;  %v301_v2 = vld [vmem:[%s257_s22 + $0x10] sm:$0xff] (%p2008_p4) }
  0x17   : > { %v303_v3 = vld [vmem:[%s257_s22 + $0x20] sm:$0xff] (%p2008_p4)  ;;  %300 = vst [vmem:[%s255_s23] sm:$0xff] (%p2008_p4), %v299_v1  ;;  %302 = vst [vmem:[%s255_s23 + $0x8] sm:$0xff] (%p2008_p4), %v301_v2  ;;  %v305_v4 = vld [vmem:[%s257_s22 + $0x30] sm:$0xff] (%p2008_p4) }
  0x18   : > { %304 = vst [vmem:[%s255_s23 + $0x10] sm:$0xff] (%p2008_p4), %v303_v3  ;;  %v307_v5 = vld [vmem:[%s257_s22 + $0x40] sm:$0xff] (%p2008_p4)  ;;  %v309_v6 = vld [vmem:[%s257_s22 + $0x50] sm:$0xff] (%p2008_p4)  ;;  %306 = vst [vmem:[%s255_s23 + $0x18] sm:$0xff] (%p2008_p4), %v305_v4 }
  0x19   : > { %308 = vst [vmem:[%s255_s23 + $0x20] sm:$0xff] (%p2008_p4), %v307_v5  ;;  %310 = vst [vmem:[%s255_s23 + $0x28] sm:$0xff] (%p2008_p4), %v309_v6  ;;  %v311_v7 = vld [vmem:[%s257_s22 + $0x60] sm:$0xff] (%p2008_p4)  ;;  %v313_v8 = vld [vmem:[%s257_s22 + $0x70] sm:$0xff] (%p2008_p4) }
  0x1a   : > { %312 = vst [vmem:[%s255_s23 + $0x30] sm:$0xff] %v311_v7  ;;  %314 = vst [vmem:[%s255_s23 + $0x38] sm:$0xff] %v313_v8 }
  0x1b PF: > { %320 = sbr.rel (!%p2008_p4) target bundleno = 37 (0x25), region = 66  ;;  %s322_s24 = sand.u32 (%p2008_p4), 1, %s1922_s30  }
  0x1c   : > { %s1636_s25 = sshll.u32 (%p2008_p4), %s1926_s9, 3  ;;  %s1842_s26 = smul.u32 (%p2008_p4), 96, %s322_s24 }
  0x1d   : > { %s326_s12 = scalar_lea.vmem (%p2008_p4), %s2304_s2, %s1636_s25 }
  0x1e   : > { %v376_v9 = vld [vmem:[%s326_s12] sm:$0xff] (%p2008_p4)  ;;  %v378_v10 = vld [vmem:[%s326_s12 + $0x10] sm:$0xff] (%p2008_p4)  ;;  %s324_s13 = scalar_lea.vmem (%p2008_p4), [#allocation8], %s1842_s26 }
  0x1f   : > { %v380_v11 = vld [vmem:[%s326_s12 + $0x20] sm:$0xff] (%p2008_p4)  ;;  %v382_v12 = vld [vmem:[%s326_s12 + $0x30] sm:$0xff] (%p2008_p4)  ;;  %377 = vst [vmem:[%s324_s13] sm:$0xff] (%p2008_p4), %v376_v9  ;;  %379 = vst [vmem:[%s324_s13 + $0x8] sm:$0xff] (%p2008_p4), %v378_v10 }
  0x20   : > { %v384_v13 = vld [vmem:[%s326_s12 + $0x40] sm:$0xff] (%p2008_p4)  ;;  %v386_v14 = vld [vmem:[%s326_s12 + $0x50] sm:$0xff] (%p2008_p4)  ;;  %381 = vst [vmem:[%s324_s13 + $0x10] sm:$0xff] (%p2008_p4), %v380_v11  ;;  %383 = vst [vmem:[%s324_s13 + $0x18] sm:$0xff] (%p2008_p4), %v382_v12 }
  0x21   : > { %385 = vst [vmem:[%s324_s13 + $0x20] sm:$0xff] (%p2008_p4), %v384_v13  ;;  %387 = vst [vmem:[%s324_s13 + $0x28] sm:$0xff] (%p2008_p4), %v386_v14  ;;  %v388_v15 = vld [vmem:[%s326_s12 + $0x60] sm:$0xff] (%p2008_p4)  ;;  %v390_v16 = vld [vmem:[%s326_s12 + $0x70] sm:$0xff] (%p2008_p4) }
  0x22   : > { %v392_v17 = vld [vmem:[%s326_s12 + $0x80] sm:$0xff]  ;;  %389 = vst [vmem:[%s324_s13 + $0x30] sm:$0xff] %v388_v15  ;;  %391 = vst [vmem:[%s324_s13 + $0x38] sm:$0xff] %v390_v16  ;;  %v394_v18 = vld [vmem:[%s326_s12 + $0x90] sm:$0xff] }
  0x23   : > { %393 = vst [vmem:[%s324_s13 + $0x40] sm:$0xff] %v392_v17  ;;  %v396_v19 = vld [vmem:[%s326_s12 + $0xa0] sm:$0xff]  ;;  %v398_v20 = vld [vmem:[%s326_s12 + $0xb0] sm:$0xff]  ;;  %395 = vst [vmem:[%s324_s13 + $0x48] sm:$0xff] %v394_v18 }
  0x24   : > { %397 = vst [vmem:[%s324_s13 + $0x50] sm:$0xff] %v396_v19  ;;  %399 = vst [vmem:[%s324_s13 + $0x58] sm:$0xff] %v398_v20 }
  0x25 PF: > { %405 = sbr.rel (!%p2008_p4) target bundleno = 44 (0x2c), region = 104  ;;  %s407_s17 = sand.u32 (%p2008_p4), 1, %s1922_s30  }
  0x26   : > { %s1637_s18 = sshll.u32 (%p2008_p4), %s1926_s9, 3  ;;  %s1843_s19 = smul.u32 (%p2008_p4), 48, %s407_s17 }
  0x27   : > { %s411_s22 = scalar_lea.vmem (%p2008_p4), %s2305_s3, %s1637_s18 }
  0x28   : > { %v449_v21 = vld [vmem:[%s411_s22] sm:$0xff] (%p2008_p4)  ;;  %v451_v22 = vld [vmem:[%s411_s22 + $0x10] sm:$0xff] (%p2008_p4)  ;;  %s409_s23 = scalar_lea.vmem (%p2008_p4), [#allocation9], %s1843_s19 }
  0x29   : > { %v453_v23 = vld [vmem:[%s411_s22 + $0x20] sm:$0xff] (%p2008_p4)  ;;  %v455_v24 = vld [vmem:[%s411_s22 + $0x30] sm:$0xff] (%p2008_p4)  ;;  %450 = vst [vmem:[%s409_s23] sm:$0xff] (%p2008_p4), %v449_v21  ;;  %452 = vst [vmem:[%s409_s23 + $0x8] sm:$0xff] (%p2008_p4), %v451_v22 }
  0x2a   : > { %v457_v25 = vld [vmem:[%s411_s22 + $0x40] sm:$0xff] (%p2008_p4)  ;;  %v459_v26 = vld [vmem:[%s411_s22 + $0x50] sm:$0xff] (%p2008_p4)  ;;  %454 = vst [vmem:[%s409_s23 + $0x10] sm:$0xff] (%p2008_p4), %v453_v23  ;;  %456 = vst [vmem:[%s409_s23 + $0x18] sm:$0xff] (%p2008_p4), %v455_v24 }
  0x2b   : > { %458 = vst [vmem:[%s409_s23 + $0x20] sm:$0xff] (%p2008_p4), %v457_v25  ;;  %460 = vst [vmem:[%s409_s23 + $0x28] sm:$0xff] (%p2008_p4), %v459_v26 }
  0x2c PF: > { %p1638_p7 = scmp.ge.s32.totalorder %s1926_s9, 1  ;;  %p465_p8 = scmp.lt.s32.totalorder %s1926_s9, 3 }
  0x2e   : > { %p466_p9 = pnand %p1638_p7, %p465_p8 }
  0x2f   : > { %p537_p10 = scmp.lt.s32.totalorder (!%p466_p9), %s1993_s10, 1  ;;  %v2044_v27 = vld [vmem:[%s2302_s0] sm:$0xff] (!%p466_p9)  ;;  %v1928_v28 = vmov (!%p466_p9), 0.0   ;;  %v1794_v2 = vpack.c.bf16 (!%p466_p9), %v14_v0, %v14_v0  ;;  %v741_v3 = vld [vmem:[%s2302_s0 + $0x8] sm:$0xff] (!%p466_p9)  ;;  %s2092_s19 = sand.u32 (!%p466_p9), 1, %s1918_s29  }
  0x30   : > { %469 = sbr.rel (%p466_p9) target bundleno = 587 (0x24b), region = 142  ;;  %854 = vmatprep.mubr.f32.mxu0 (!%p466_p9), %v1928_v28  ;;  %1775 = vmatprep.mubr.f32.mxu1 (!%p466_p9), %v2044_v27  ;;  %s1639_s22 = sshll.u32 (!%p466_p9), %s2092_s19, 6 }
  0x31   : > { %s1845_s20 = smul.u32 (!%p466_p9), 48, %s2092_s19  ;;  %s474_s23 = scalar_lea.vmem (!%p466_p9), [#allocation7], %s1639_s22 }
  0x32   : > { %s1844_s15 = smul.u32 (!%p466_p9), 96, %s2092_s19 }
  0x33   : > { %s2095_s21 = scalar_lea.vmem (!%p466_p9), [#allocation9], %s1845_s20  ;;  %s2112_s29 = scalar_lea.vmem (!%p466_p9), [#allocation10], %s1845_s20 }
  0x34   : > { %v1143_v4 = vld [vmem:[%s2095_s21 + $0x15] sm:$0x1] (!%p466_p9)  ;;  %v1340_v5 = vld [vmem:[%s2095_s21 + $0x2b] sm:$0x1] (!%p466_p9)  ;;  %v1676_v10 = vld [vmem:[%s2095_s21 + $0x9] ss:$0 sm:$0xff] (!%p466_p9) }
  0x35   : > { %v1144_v6 = vadd.f32 (!%p466_p9), 0.001, %v1143_v4  ;;  %v1341_v7 = vadd.f32 (!%p466_p9), 0.001, %v1340_v5  ;;  %v1680_v11 = vld [vmem:[%s2095_s21 + $0xc] ss:$0 sm:$0xff] (!%p466_p9) }
  0x36   : > { %v1684_v12 = vld [vmem:[%s2095_s21 + $0xf] ss:$0 sm:$0xff] (!%p466_p9)  ;;  %v1698_v13 = vld [vmem:[%s2095_s21 + $0x1f] ss:$0 sm:$0xff] (!%p466_p9)  ;;  %v2104_v14 = vld [vmem:[%s2095_s21 + $0x22] ss:$0 sm:$0xff] (!%p466_p9) }
  0x37   : > { %s2049_s25 = scalar_select %p537_p10, %s1993_s10, 1  ;;  %v1145_v8 = vmul.f32 200.0, %v1144_v6  ;;  %v1342_v9 = vmul.f32 200.0, %v1341_v7  ;;  %v2109_v16 = vld [vmem:[%s2095_s21 + $0x25] ss:$0 sm:$0xff] }
  0x38   : > { %v1678_v17 = vld [vmem:[%s2095_s21 + $0xb] ss:$0 sm:$0xff]  ;;  %v1682_v20 = vld [vmem:[%s2095_s21 + $0xe] ss:$0 sm:$0xff]  ;;  %v1686_v21 = vld [vmem:[%s2095_s21 + $0x11] ss:$0 sm:$0xff] }
  0x39   : > { %s1846_s26 = smul.u32 192, %s2049_s25  ;;  %1876 = vrcp.f32 %v1145_v8  ;;  %v1687_v5 = vld [vmem:[%s2095_s21 + $0x14] ss:$0 sm:$0xff]  ;;  %s2241_s24 = scalar_lea.vmem [#allocation8], %s1844_s15 }
  0x3a   : > { %1878 = vrcp.f32 %v1342_v9 }
  0x3b   : > { %s2055_s28 = scalar_lea.vmem %s2306_s4, %s1846_s26  ;;  %s1641_s26 = sshll.u32 %s2049_s25, 3 }
  0x3c   : > { %v1643_v29 = vld [vmem:[%s2055_s28 + $0x8] sm:$0xff]  ;;  %v1646_v30 = vld [vmem:[%s2055_s28 + $0x20] sm:$0xff]  ;;  %v1645_v33 = vld [vmem:[%s2055_s28 + $0x18] sm:$0xff]  ;;  %s549_s19 = scalar_lea.vmem %s2309_s7, %s1641_s26  ;;  %s1722_s25 = sshll.u32 (%p2012_p5), %s1993_s10, 3 }
  0x3d   : > { %v550_v31 = vld [vmem:[%s2055_s28] sm:$0xff]  ;;  %v1778_v32 = vpack.c.bf16 %v1646_v30, %v1643_v29  ;;  %v1644_v34 = vld [vmem:[%s2055_s28 + $0x10] sm:$0xff]  ;;  %v1647_v35 = vld [vmem:[%s2055_s28 + $0x28] sm:$0xff] }
  0x3e   : > { %v1780_v36 = vpack.c.bf16 %v1645_v33, %v550_v31  ;;  %v1810_v37 = vpack.c.bf16 %v1647_v35, %v1644_v34  ;;  %v1649_v38 = vld [vmem:[%s2055_s28 + $0x38] sm:$0xff]  ;;  %v1652_v39 = vld [vmem:[%s2055_s28 + $0x50] sm:$0xff]  ;;  %v1651_v42 = vld [vmem:[%s2055_s28 + $0x48] sm:$0xff] }
  0x3f   : > { %v1648_v40 = vld [vmem:[%s2055_s28 + $0x30] sm:$0xff]  ;;  %1779 = vmatprep.subr.bf16.mxu0 %v1778_v32  ;;  %v1782_v41 = vpack.c.bf16 %v1652_v39, %v1649_v38  ;;  %v1650_v43 = vld [vmem:[%s2055_s28 + $0x40] sm:$0xff]  ;;  %v1653_v44 = vld [vmem:[%s2055_s28 + $0x58] sm:$0xff] }
  0x40   : > { %1781 = vmatpush1.bf16.msra.mxu0 %v1780_v36  ;;  %1811 = vmatprep.subr.bf16.mxu1 %v1810_v37  ;;  %v1784_v45 = vpack.c.bf16 %v1651_v42, %v1648_v40  ;;  %v1814_v46 = vpack.c.bf16 %v1653_v44, %v1650_v43  ;;  %v1655_v47 = vld [vmem:[%s2055_s28 + $0x68] sm:$0xff]  ;;  %v1658_v48 = vld [vmem:[%s2055_s28 + $0x80] sm:$0xff]  ;;  %v1657_v51 = vld [vmem:[%s2055_s28 + $0x78] sm:$0xff] }
  0x41   : > { %v1654_v49 = vld [vmem:[%s2055_s28 + $0x60] sm:$0xff]  ;;  %1813 = vmatpush3.bf16.msra.mxu1 %v1810_v37  ;;  %1783 = vmatprep.subr.bf16.mxu0 %v1782_v41  ;;  %v1786_v50 = vpack.c.bf16 %v1658_v48, %v1655_v47  ;;  %v1656_v52 = vld [vmem:[%s2055_s28 + $0x70] sm:$0xff]  ;;  %v1659_v53 = vld [vmem:[%s2055_s28 + $0x88] sm:$0xff] }
  0x42   : > { %1815 = vmatprep.subr.bf16.mxu1 %v1814_v46  ;;  %v1818_v54 = vpack.c.bf16 %v1659_v53, %v1656_v52  ;;  %v1661_v55 = vld [vmem:[%s2055_s28 + $0x98] sm:$0xff]  ;;  %v1664_v56 = vld [vmem:[%s2055_s28 + $0xb0] sm:$0xff]  ;;  %v1662_v57 = vld [vmem:[%s2055_s28 + $0xa0] sm:$0xff]  ;;  %v1788_v59 = vpack.c.bf16 %v1657_v51, %v1654_v49 }
  0x43   : > { %v1665_v58 = vld [vmem:[%s2055_s28 + $0xb8] sm:$0xff]  ;;  %v1790_v60 = vpack.c.bf16 %v1664_v56, %v1661_v55  ;;  %v1660_v61 = vld [vmem:[%s2055_s28 + $0x90] sm:$0xff]  ;;  %v1663_v62 = vld [vmem:[%s2055_s28 + $0xa8] sm:$0xff]  ;;  %s545_s28 = scalar_lea.vmem %s2308_s6, %s1641_s26 }
  0x44   : > { %1785 = vmatpush1.bf16.msra.mxu0 %v1784_v45  ;;  %v1822_v63 = vpack.c.bf16 %v1665_v58, %v1662_v57  ;;  %v1792_v1 = vpack.c.bf16 %v1663_v62, %v1660_v61  ;;  %v1681_v33 = vld [vmem:[%s2095_s21 + $0xd] ss:$0 sm:$0xff]  ;;  %v1685_v39 = vld [vmem:[%s2095_s21 + $0x10] ss:$0 sm:$0xff]  ;;  %v1699_v49 = vld [vmem:[%s2095_s21 + $0x20] ss:$0 sm:$0xff] }
  0x45   : > { %1817 = vmatpush3.bf16.msra.mxu1 %v1814_v46  ;;  %1787 = vmatprep.subr.bf16.mxu0 %v1786_v50 }
  0x46   : > { %1819 = vmatprep.subr.bf16.mxu1 %v1818_v54 }
  0x48   : > { %1789 = vmatpush1.bf16.msra.mxu0 %v1788_v59  ;;  %v1708_v59 = vld [vmem:[%s2095_s21 + $0x27] ss:$0 sm:$0xff] }
  0x49   : > { %1821 = vmatpush3.bf16.msra.mxu1 %v1818_v54  ;;  %1791 = vmatprep.subr.bf16.mxu0 %v1790_v60  ;;  %v1704_v54 = vld [vmem:[%s2095_s21 + $0x24] ss:$0 sm:$0xff] }
  0x4a   : > { %1823 = vmatprep.subr.bf16.mxu1 %v1822_v63 }
  0x4c   : > { %1793 = vmatpush1.bf16.msra.mxu0 %v1792_v1  ;;  %v2179_v1 = vpop.eup %1876 }
  0x4d   : > { %1825 = vmatpush3.bf16.msra.mxu1 %v1822_v63  ;;  %1795 = vmatprep.subr.bf16.mxu0 %v1794_v2  ;;  %v2189_v7 = vpop.eup %1878 }
  0x4e   : > { %1827 = vmatprep.subr.bf16.mxu1 %v1794_v2 }
  0x50   : > { %1797 = vmatpush1.bf16.msra.mxu0 %v1794_v2 }
  0x51   : > { %1829 = vmatpush3.bf16.msra.mxu1 %v1794_v2  ;;  %1799 = vmatprep.subr.bf16.mxu0 %v1794_v2 }
  0x52   : > { %1831 = vmatprep.subr.bf16.mxu1 %v1794_v2 }
  0x54   : > { %1801 = vmatpush1.bf16.msra.mxu0 %v1794_v2 }
  0x55   : > { %1833 = vmatpush3.bf16.msra.mxu1 %v1794_v2  ;;  %1803 = vmatprep.subr.bf16.mxu0 %v1794_v2 }
  0x56   : > { %1835 = vmatprep.subr.bf16.mxu1 %v1794_v2 }
  0x58   : > { %1805 = vmatpush1.bf16.msra.mxu0 %v1794_v2 }
  0x59   : > { %1837 = vmatpush3.bf16.msra.mxu1 %v1794_v2  ;;  %1807 = vmatprep.subr.bf16.mxu0 %v1794_v2 }
  0x5a   : > { %1839 = vmatprep.subr.bf16.mxu1 %v1794_v2 }
  0x5c   : > { %1809 = vmatpush1.bf16.msra.mxu0 %v1794_v2 }
  0x5d   : > { %1841 = vmatpush3.bf16.msra.mxu1 %v1794_v2 }
  0x5f   : > { %855 = vmatmul.mubr.f32.vlgmr.msra.gmra.mrb[0].mxu0 %v2044_v27  ;;  %v1700_v27 = vld [vmem:[%s2095_s21 + $0x21] ss:$0 sm:$0xff] }
  0x60   : > { %1776 = vmatmul.mubr.f32.vlgmr.msra.gmra.mrb[0].mxu1 %v741_v3  ;;  %860 = vmatprep.mubr.f32.mxu0 %v1928_v28  ;;  %v1677_v28 = vld [vmem:[%s2095_s21 + $0xa] ss:$0 sm:$0xff] }
  0x63   : > { %861 = vmatmul.mubr.f32.gmra.mrb[2].mxu0 %v741_v3 }
 0x132   : > { %v2106_v15 = vpop.f32.mrb[0].mxu0 }
 0x133   : > { %942 = vst [vmem:[%s2112_s29] sm:$0xff] %v2106_v15  ;;  %v2116_v18 = vpop.f32.mrb[1].mxu0  ;;  %v2118_v19 = vpop.f32.mrb[0].mxu1  ;;  %v1000_v22 = vmul.f32 %v1676_v10, %v2106_v15  ;;  %v1032_v23 = vmul.f32 %v1680_v11, %v2106_v15  ;;  %v1064_v24 = vmul.f32 %v1684_v12, %v2106_v15  ;;  %v1197_v25 = vmul.f32 %v1698_v13, %v2106_v15 }
 0x134   : > { %1666 = vst [vmem:[%s2112_s29 + $0x10] sm:$0xff] %v2116_v18  ;;  %1669 = vst [vmem:[%s2112_s29 + $0x28] sm:$0xff] %v2118_v19  ;;  %v2130_v26 = vpop.f32.mrb[1].mxu1  ;;  %v2136_v29 = vmul.f32 %v2104_v14, %v2106_v15  ;;  %v2140_v30 = vmul.f32 %v2109_v16, %v2106_v15  ;;  %v1017_v31 = vmul.f32 %v2118_v19, %v1678_v17 }
 0x135   : > { %1668 = vst [vmem:[%s2112_s29 + $0x20] sm:$0xff] %v2130_v26  ;;  %v1049_v32 = vmul.f32 %v2118_v19, %v1682_v20  ;;  %v1016_v34 = vmul.f32 %v1678_v17, %v2130_v26  ;;  %v1048_v35 = vmul.f32 %v1682_v20, %v2130_v26  ;;  %v1080_v36 = vmul.f32 %v1686_v21, %v2130_v26 }
 0x136   : > { %v1081_v37 = vmul.f32 %v2118_v19, %v1686_v21  ;;  %v2151_v38 = vpop.f32.mrb[2].mxu0  ;;  %v1213_v40 = vmul.f32 %v1700_v27, %v2130_v26  ;;  %v1214_v41 = vmul.f32 %v2118_v19, %v1700_v27  ;;  %v1007_v44 = vmul.f32 %v1677_v28, %v2116_v18 }
 0x137   : > { %943 = vst [vmem:[%s2112_s29 + $0x8] sm:$0xff] %v2151_v38  ;;  %v2158_v42 = vpop.f32.mrb[3].mxu0  ;;  %v1001_v43 = vmul.f32 %v1676_v10, %v2151_v38  ;;  %v1033_v46 = vmul.f32 %v1680_v11, %v2151_v38  ;;  %v1039_v47 = vmul.f32 %v1681_v33, %v2116_v18  ;;  %v1065_v51 = vmul.f32 %v1684_v12, %v2151_v38  ;;  %v1703_v12 = vld [vmem:[%s2095_s21 + $0x23] ss:$0 sm:$0xff] }
 0x138   : > { %1667 = vst [vmem:[%s2112_s29 + $0x18] sm:$0xff] %v2158_v42  ;;  %v1008_v45 = vmul.f32 %v1677_v28, %v2158_v42  ;;  %v1040_v48 = vmul.f32 %v1681_v33, %v2158_v42  ;;  %v1009_v50 = vadd.f32 %v1007_v44, %v1000_v22  ;;  %v1071_v52 = vmul.f32 %v1685_v39, %v2116_v18  ;;  %v1707_v22 = vld [vmem:[%s2095_s21 + $0x26] ss:$0 sm:$0xff] }
 0x139   : > { %v1072_v53 = vmul.f32 %v1685_v39, %v2158_v42  ;;  %v1041_v56 = vadd.f32 %v1039_v47, %v1032_v23  ;;  %v1198_v58 = vmul.f32 %v1698_v13, %v2151_v38  ;;  %v1204_v63 = vmul.f32 %v1699_v49, %v2116_v18  ;;  %v953_v23 = vld [vmem:[%s474_s23] sm:$0xff] }
 0x13a   : > { %v1010_v55 = vadd.f32 %v1008_v45, %v1001_v43  ;;  %v1042_v57 = vadd.f32 %v1040_v48, %v1033_v46  ;;  %v2176_v60 = vadd.f32 %v1016_v34, %v1009_v50  ;;  %v1073_v61 = vadd.f32 %v1071_v52, %v1064_v24  ;;  %v1671_v45 = vld [vmem:[%s474_s23 + $0x38] sm:$0xff]  ;;  %v1674_v46 = vld [vmem:[%s474_s23 + $0x20] sm:$0xff] }
 0x13b   : > { %v1074_v62 = vadd.f32 %v1072_v53, %v1065_v51  ;;  %v2183_v3 = vadd.f32 %v1048_v35, %v1041_v56  ;;  %v1205_v6 = vmul.f32 %v1699_v49, %v2158_v42  ;;  %v1245_v8 = vmul.f32 %v1704_v54, %v2130_v26  ;;  %v1670_v35 = vld [vmem:[%s474_s23 + $0x30] sm:$0xff]  ;;  %v1675_v51 = vld [vmem:[%s474_s23 + $0x28] sm:$0xff] }
 0x13c   : > { %v2181_v2 = vadd.f32 %v1017_v31, %v1010_v55  ;;  %v2185_v4 = vadd.f32 %v1049_v32, %v1042_v57  ;;  %v1082_v9 = vadd.f32 %v1080_v36, %v1073_v61  ;;  %v1206_v11 = vadd.f32 %v1204_v63, %v1197_v25  ;;  %v954_v36 = vld [vmem:[%s474_s23 + $0x8] sm:$0xff] }
 0x13d   : > { %v1083_v10 = vadd.f32 %v1081_v37, %v1074_v62  ;;  %v1246_v13 = vmul.f32 %v2118_v19, %v1704_v54  ;;  %v1277_v17 = vmul.f32 %v1708_v59, %v2130_v26  ;;  %v1278_v20 = vmul.f32 %v2118_v19, %v1708_v59  ;;  %v1709_v53 = vld [vmem:[%s2095_s21 + $0x2a] ss:$0 sm:$0xff]  ;;  %v1683_v59 = vld [vmem:[%s2095_s21 + $0x13] ss:$0 sm:$0xff] }
 0x13e   : > { %v1207_v21 = vadd.f32 %v1205_v6, %v1198_v58  ;;  %v1089_v24 = vadd.f32 %v1687_v5, %v1082_v9  ;;  %v2199_v28 = vadd.f32 %v1213_v40, %v1206_v11  ;;  %v1230_v31 = vmul.f32 %v2104_v14, %v2151_v38  ;;  %v1672_v14 = vld [vmem:[%s474_s23 + $0x10] sm:$0xff] }
 0x13f   : > { %v1090_v27 = vadd.f32 %v1687_v5, %v1083_v10  ;;  %v1236_v32 = vmul.f32 %v1703_v12, %v2116_v18  ;;  %v1237_v33 = vmul.f32 %v1703_v12, %v2158_v42  ;;  %v1262_v34 = vmul.f32 %v2109_v16, %v2151_v38 }
 0x140   : > { %v2203_v25 = vadd.f32 %v1214_v41, %v1207_v21  ;;  %1880 = vrcp.f32 %v1089_v24  ;;  %v1268_v37 = vmul.f32 %v1707_v22, %v2116_v18  ;;  %v1269_v39 = vmul.f32 %v1707_v22, %v2158_v42  ;;  %v1673_v41 = vld [vmem:[%s474_s23 + $0x18] sm:$0xff]  ;;  %v1688_v24 = vld [vmem:[%s2095_s21] ss:$0 sm:$0xff]  ;;  %s1425_s23 = scalar_lea.vmem (%p2012_p5), %s2310_s8, %s1722_s25 }
 0x141   : > { %v955_v40 = vsub.f32 %v2106_v15, %v953_v23  ;;  %1882 = vrcp.f32 %v1090_v27  ;;  %v1238_v43 = vadd.f32 %v1236_v32, %v2136_v29  ;;  %v1239_v44 = vadd.f32 %v1237_v33, %v1230_v31  ;;  %v1689_v27 = vld [vmem:[%s2095_s21 + $0x1] ss:$0 sm:$0xff] }
 0x142   : > { %v1157_v16 = vlaneseq  ;;  %v1270_v47 = vadd.f32 %v1268_v37, %v2140_v30  ;;  %v1271_v48 = vadd.f32 %v1269_v39, %v1262_v34  ;;  %v956_v49 = vsub.f32 %v2151_v38, %v954_v36  ;;  %v1679_v30 = vld [vmem:[%s2095_s21 + $0x12] ss:$0 sm:$0xff] }
 0x143   : > { %v957_v50 = vmul.f32 %v1670_v35, %v955_v40  ;;  %v2215_v15 = vadd.f32 %v1245_v8, %v1238_v43  ;;  %v2217_v52 = vadd.f32 %v1246_v13, %v1239_v44  ;;  %v962_v29 = vsub.f32 %v2116_v18, %v1672_v14  ;;  %v1705_v43 = vld [vmem:[%s2095_s21 + $0x29] ss:$0 sm:$0xff] }
 0x144   : > { %v963_v54 = vsub.f32 %v2158_v42, %v1673_v41  ;;  %v1279_v55 = vadd.f32 %v1277_v17, %v1270_v47  ;;  %v1280_v56 = vadd.f32 %v1278_v20, %v1271_v48  ;;  %v958_v57 = vmul.f32 %v1671_v45, %v956_v49  ;;  %v1701_v41 = vld [vmem:[%s2095_s21 + $0x28] ss:$0 sm:$0xff] }
 0x145   : > { %v969_v58 = vsub.f32 %v2130_v26, %v1674_v46  ;;  %v964_v61 = vmul.f32 %v1670_v35, %v962_v29  ;;  %v970_v62 = vsub.f32 %v2118_v19, %v1675_v51  ;;  %v1158_v63 = vshrl.u32 %v1157_v16, 7  ;;  %v1690_v46 = vld [vmem:[%s2095_s21 + $0x2] ss:$0 sm:$0xff] }
 0x146   : > { %v965_v38 = vmul.f32 %v1671_v45, %v963_v54  ;;  %v1286_v5 = vadd.f32 %v1709_v53, %v1279_v55  ;;  %v1287_v6 = vadd.f32 %v1709_v53, %v1280_v56  ;;  %v973_v9 = vmul.f32 %v957_v50, %v957_v50  ;;  %v1693_v50 = vld [vmem:[%s2095_s21 + $0x5] ss:$0 sm:$0xff] }
 0x147   : > { %v971_v8 = vmul.f32 %v1670_v35, %v969_v58  ;;  %v972_v18 = vmul.f32 %v1671_v45, %v970_v62  ;;  %v974_v42 = vmul.f32 %v958_v57, %v958_v57  ;;  %v975_v10 = vmul.f32 %v964_v61, %v964_v61  ;;  %v1692_v35 = vld [vmem:[%s2095_s21 + $0x4] ss:$0 sm:$0xff] }
 0x148   : > { %v976_v11 = vmul.f32 %v965_v38, %v965_v38  ;;  %v1025_v26 = vadd.f32 %v1679_v30, %v2176_v60  ;;  %v1057_v12 = vadd.f32 %v1683_v59, %v2183_v3  ;;  %1884 = vrcp.f32 %v1286_v5  ;;  %v1691_v60 = vld [vmem:[%s2095_s21 + $0x3] ss:$0 sm:$0xff] }
 0x149   : > { %v979_v13 = vmul.f32 %v971_v8, %v971_v8  ;;  %1886 = vrcp.f32 %v1287_v6  ;;  %v977_v19 = vadd.f32 %v975_v10, %v973_v9  ;;  %v980_v20 = vmul.f32 %v972_v18, %v972_v18  ;;  %v1151_v29 = vld [vmem:[%s2241_s24] sm:$0xff]  ;;  %v1695_v10 = vld [vmem:[%s2241_s24 + $0x48] sm:$0xff] }
 0x14a   : > { %v978_v17 = vadd.f32 %v976_v11, %v974_v42  ;;  %v1881_v21 = vpop.eup %1880  ;;  %v1026_v22 = vadd.f32 %v1679_v30, %v2181_v2  ;;  %v1058_v23 = vadd.f32 %v1683_v59, %v2185_v4  ;;  %v1159_v39 = vsub.s32 0, %v1158_v63  ;;  %v1694_v58 = vld [vmem:[%s2241_s24 + $0x40] sm:$0xff]  ;;  %v1152_v30 = vld [vmem:[%s2241_s24 + $0x8] sm:$0xff] }
 0x14b   : > { %v1883_v31 = vpop.eup %1882  ;;  %v981_v3 = vadd.f32 %v979_v13, %v977_v19  ;;  %v1092_v33 = vmul.f32 %v1881_v21, %v1025_v26  ;;  %v1095_v34 = vmul.f32 %v1881_v21, %v1057_v12  ;;  %v1696_v59 = vld [vmem:[%s2241_s24 + $0x20] sm:$0xff]  ;;  %v1222_v61 = vadd.f32 %v1701_v41, %v2199_v28  ;;  %v1713_v19 = vld [vmem:[%s2095_s21 + $0x19] ss:$0 sm:$0xff] }
 0x14c   : > { %v982_v32 = vadd.f32 %v980_v20, %v978_v17  ;;  %v1094_v36 = vmul.f32 %v1883_v31, %v1026_v22  ;;  %v1096_v37 = vmul.f32 %v1883_v31, %v1058_v23  ;;  %v1160_v54 = vrot.slane %v2179_v1, %v1159_v39  ;;  %v1710_v8 = vld [vmem:[%s2095_s21 + $0x16] ss:$0 sm:$0xff]  ;;  %v1711_v9 = vld [vmem:[%s2095_s21 + $0x17] ss:$0 sm:$0xff]  ;;  %v1714_v31 = vld [vmem:[%s2095_s21 + $0x1a] ss:$0 sm:$0xff] }
 0x14d   : > { %v1102_v2 = vmul.f32 %v1688_v24, %v1092_v33  ;;  %v1109_v4 = vmul.f32 %v1689_v27, %v1095_v34  ;;  %v1125_v14 = vmul.f32 %v1691_v60, %v1092_v33  ;;  %v1132_v47 = vmul.f32 %v1692_v35, %v1095_v34 }
 0x14e   : > { %v983_v40 = vadd.f32 %v982_v32, %v981_v3  ;;  %v1103_v44 = vmul.f32 %v1688_v24, %v1094_v36  ;;  %v1110_v45 = vmul.f32 %v1689_v27, %v1096_v37  ;;  %v1126_v16 = vmul.f32 %v1691_v60, %v1094_v36  ;;  %v1712_v60 = vld [vmem:[%s2095_s21 + $0x18] ss:$0 sm:$0xff] }
 0x14f   : > { %v1111_v48 = vadd.f32 %v1109_v4, %v1102_v2  ;;  %v1133_v49 = vmul.f32 %v1692_v35, %v1096_v37  ;;  %v1134_v53 = vadd.f32 %v1132_v47, %v1125_v14  ;;  %v2246_v55 = vrot.slane %v2189_v7, %v1159_v39  ;;  %v1697_v7 = vld [vmem:[%s2241_s24 + $0x28] sm:$0xff] }
 0x150   : > { %984 = vadd.xlane.f32.xlu0 %v983_v40  ;;  %v1112_v51 = vadd.f32 %v1110_v45, %v1103_v44  ;;  %v1254_v38 = vadd.f32 %v1705_v43, %v2215_v15  ;;  %v1223_v63 = vadd.f32 %v1701_v41, %v2203_v25  ;;  %v1255_v5 = vadd.f32 %v1705_v43, %v2217_v52  ;;  %v1718_v40 = vld [vmem:[%s2241_s24 + $0x10] sm:$0xff]  ;;  %v1719_v43 = vld [vmem:[%s2241_s24 + $0x18] sm:$0xff] }
 0x151   : > { %v1118_v56 = vadd.f32 %v1690_v46, %v1111_v48  ;;  %v1135_v57 = vadd.f32 %v1133_v49, %v1126_v16  ;;  %v1141_v6 = vadd.f32 %v1693_v50, %v1134_v53  ;;  %v1715_v47 = vld [vmem:[%s2095_s21 + $0x1b] ss:$0 sm:$0xff]  ;;  %v1716_v48 = vld [vmem:[%s2241_s24 + $0x50] sm:$0xff] }
 0x152   : > { %v1885_v62 = vpop.eup %1884  ;;  %v1119_v1 = vadd.f32 %v1690_v46, %v1112_v51  ;;  %v1717_v53 = vld [vmem:[%s2241_s24 + $0x58] sm:$0xff] }
 0x153   : > { %v1887_v18 = vpop.eup %1886  ;;  %v1142_v42 = vadd.f32 %v1693_v50, %v1135_v57  ;;  %v1153_v11 = vsub.f32 %v1118_v56, %v1151_v29  ;;  %v1289_v26 = vmul.f32 %v1885_v62, %v1222_v61  ;;  %v1292_v28 = vmul.f32 %v1885_v62, %v1254_v38  ;;  %v1721_v62 = vld [vmem:[%s2241_s24 + $0x38] sm:$0xff] }
 0x154   : > { %v1154_v15 = vsub.f32 %v1119_v1, %v1152_v30  ;;  %v1166_v12 = vsub.f32 %v1141_v6, %v1696_v59  ;;  %v1291_v13 = vmul.f32 %v1887_v18, %v1223_v63  ;;  %v1293_v25 = vmul.f32 %v1887_v18, %v1255_v5  ;;  %v1720_v30 = vld [vmem:[%s2241_s24 + $0x30] sm:$0xff] }
 0x155   : > { %v1155_v52 = vmul.f32 %v1694_v58, %v1153_v11  ;;  %v1167_v17 = vsub.f32 %v1142_v42, %v1697_v7  ;;  %v1299_v20 = vmul.f32 %v1710_v8, %v1289_v26  ;;  %v1306_v21 = vmul.f32 %v1711_v9, %v1292_v28 }
 0x156   : > { %v1156_v22 = vmul.f32 %v1695_v10, %v1154_v15  ;;  %v1168_v23 = vmul.f32 %v1694_v58, %v1166_v12  ;;  %v1300_v24 = vmul.f32 %v1710_v8, %v1291_v13  ;;  %v1307_v27 = vmul.f32 %v1711_v9, %v1293_v25 }
 0x157   : > { %v1161_v3 = vmul.f32 %v1160_v54, %v1155_v52  ;;  %v1169_v32 = vmul.f32 %v1695_v10, %v1167_v17  ;;  %v1308_v33 = vadd.f32 %v1306_v21, %v1299_v20  ;;  %v1322_v34 = vmul.f32 %v1713_v19, %v1289_v26 }
 0x158   : > { %v1162_v35 = vmul.f32 %v1160_v54, %v1156_v22  ;;  %v1170_v36 = vmul.f32 %v1168_v23, %v1160_v54  ;;  %v1309_v37 = vadd.f32 %v1307_v27, %v1300_v24  ;;  %v1323_v39 = vmul.f32 %v1713_v19, %v1291_v13 }
 0x159   : > { %v1171_v2 = vmul.f32 %v1169_v32, %v1160_v54  ;;  %v1172_v4 = vmul.f32 %v1161_v3, %v1161_v3  ;;  %v1315_v14 = vadd.f32 %v1712_v60, %v1308_v33  ;;  %v1329_v41 = vmul.f32 %v1714_v31, %v1292_v28 }
 0x15a   : > { %v1173_v44 = vmul.f32 %v1162_v35, %v1162_v35  ;;  %v1174_v45 = vmul.f32 %v1170_v36, %v1170_v36  ;;  %v1316_v46 = vadd.f32 %v1712_v60, %v1309_v37  ;;  %v1330_v16 = vmul.f32 %v1714_v31, %v1293_v25 }
 0x15b   : > { %v1175_v49 = vmul.f32 %v1171_v2, %v1171_v2  ;;  %v1176_v50 = vadd.f32 200.0, %v1172_v4  ;;  %v1331_v51 = vadd.f32 %v1329_v41, %v1322_v34  ;;  %v1351_v29 = vsub.f32 %v1315_v14, %v1718_v40 }
 0x15c   : > { %v1177_v56 = vadd.f32 200.0, %v1173_v44  ;;  %v1184_v57 = vadd.f32 200.0, %v1174_v45  ;;  %v1332_v54 = vadd.f32 %v1330_v16, %v1323_v39  ;;  %v1352_v58 = vsub.f32 %v1316_v46, %v1719_v43 }
 0x15d   : > { %1888 = vrcp.f32 %v1176_v50  ;;  %v1185_v59 = vadd.f32 200.0, %v1175_v49  ;;  %v1338_v61 = vadd.f32 %v1715_v47, %v1331_v51  ;;  %v1353_v38 = vmul.f32 %v1716_v48, %v1351_v29 }
 0x15e   : > { %1890 = vrcp.f32 %v1177_v56  ;;  %v1339_v63 = vadd.f32 %v1715_v47, %v1332_v54  ;;  %v1354_v5 = vmul.f32 %v1717_v53, %v1352_v58  ;;  %v1463_v58 = vld [vmem:[%s2112_s29] sm:$0xff] (%p2012_p5) }
 0x15f   : > { %1892 = vrcp.f32 %v1184_v57  ;;  %v1359_v1 = vmul.f32 %v2246_v55, %v1353_v38  ;;  %v1364_v6 = vsub.f32 %v1338_v61, %v1720_v30  ;;  %v1465_v30 = vld [vmem:[%s2112_s29 + $0x8] sm:$0xff] (%p2012_p5)  ;;  %v1469_v61 = vld [vmem:[%s2112_s29 + $0x18] sm:$0xff] (%p2012_p5)  ;;  %v1471_v38 = vld [vmem:[%s2112_s29 + $0x20] sm:$0xff] (%p2012_p5)  ;;  %1464 = vst [vmem:[%s1425_s23] sm:$0xff] (%p2012_p5), %v1463_v58 }
 0x160   : > { %1894 = vrcp.f32 %v1185_v59  ;;  %v1360_v7 = vmul.f32 %v2246_v55, %v1354_v5  ;;  %v1365_v8 = vsub.f32 %v1339_v63, %v1721_v62  ;;  %v1467_v59 = vld [vmem:[%s2112_s29 + $0x10] sm:$0xff] (%p2012_p5)  ;;  %v1473_v62 = vld [vmem:[%s2112_s29 + $0x28] sm:$0xff] (%p2012_p5)  ;;  %1466 = vst [vmem:[%s1425_s23 + $0x10] sm:$0xff] (%p2012_p5), %v1465_v30  ;;  %1470 = vst [vmem:[%s1425_s23 + $0x30] sm:$0xff] (%p2012_p5), %v1469_v61 }
 0x161   : > { %v1366_v9 = vmul.f32 %v1716_v48, %v1364_v6  ;;  %v1370_v18 = vmul.f32 %v1359_v1, %v1359_v1  ;;  %1468 = vst [vmem:[%s1425_s23 + $0x20] sm:$0xff] (%p2012_p5), %v1467_v59  ;;  %1472 = vst [vmem:[%s1425_s23 + $0x40] sm:$0xff] (%p2012_p5), %v1471_v38 }
 0x162   : > { %v1367_v42 = vmul.f32 %v1717_v53, %v1365_v8  ;;  %v1371_v10 = vmul.f32 %v1360_v7, %v1360_v7  ;;  %1474 = vst [vmem:[%s1425_s23 + $0x50] sm:$0xff] (%p2012_p5), %v1473_v62 }
 0x163   : > { %v1368_v11 = vmul.f32 %v1366_v9, %v2246_v55  ;;  %v1374_v26 = vadd.f32 200.0, %v1370_v18 }
 0x164   : > { %v1369_v28 = vmul.f32 %v1367_v42, %v2246_v55  ;;  %v1375_v15 = vadd.f32 200.0, %v1371_v10 }
 0x165   : > { %v1372_v12 = vmul.f32 %v1368_v11, %v1368_v11  ;;  %1896 = vrcp.f32 %v1374_v26 }
 0x166   : > { %v1373_v13 = vmul.f32 %v1369_v28, %v1369_v28  ;;  %1898 = vrcp.f32 %v1375_v15 }
 0x167   : > { %v1889_v25 = vpop.eup %1888  ;;  %v1382_v19 = vadd.f32 200.0, %v1372_v12 }
 0x168   : > { %v1891_v52 = vpop.eup %1890  ;;  %v1179_v17 = vmul.f32 %v1889_v25, %v1172_v4  ;;  %v1383_v20 = vadd.f32 200.0, %v1373_v13 }
 0x169   : > { %v1893_v21 = vpop.eup %1892  ;;  %v1181_v22 = vmul.f32 %v1891_v52, %v1173_v44  ;;  %1900 = vrcp.f32 %v1382_v19 }
 0x16a   : > { %v1895_v23 = vpop.eup %1894  ;;  %v1187_v24 = vmul.f32 %v1893_v21, %v1174_v45  ;;  %1902 = vrcp.f32 %v1383_v20 }
 0x16b   : > { %v1189_v27 = vmul.f32 %v1895_v23, %v1175_v49 }
 0x16c   : > { %v1190_v60 = vadd.f32 %v1187_v24, %v1179_v17 }
 0x16d   : > { %v1191_v31 = vadd.f32 %v1189_v27, %v1181_v22 }
 0x16f   : > { %v1897_v55 = vpop.eup %1896 }
 0x170   : > { %v1899_v3 = vpop.eup %1898  ;;  %v1377_v32 = vmul.f32 %v1897_v55, %v1370_v18 }
 0x171   : > { %v1379_v33 = vmul.f32 %v1899_v3, %v1371_v10 }
 0x172   : > { %v1380_v34 = vadd.f32 %v1377_v32, %v1190_v60 }
 0x173   : > { %v1901_v35 = vpop.eup %1900  ;;  %v1381_v36 = vadd.f32 %v1379_v33, %v1191_v31 }
 0x174   : > { %v1903_v37 = vpop.eup %1902  ;;  %v1385_v39 = vmul.f32 %v1901_v35, %v1372_v12 }
 0x175   : > { %v1387_v40 = vmul.f32 %v1903_v37, %v1373_v13 }
 0x176   : > { %v1388_v2 = vadd.f32 %v1385_v39, %v1380_v34 }
 0x177   : > { %v1389_v4 = vadd.f32 %v1387_v40, %v1381_v36 }
 0x179   : > { %v1390_v14 = vadd.f32 %v1389_v4, %v1388_v2 }
 0x17b   : > { %1391 = vadd.xlane.f32.xlu0 %v1390_v14 }
 0x1dd   : > { %v985_v41 = vpop.xlane.xlu0 %984 }
 0x1de   : > { %v986_v43 = vrot.slane %v985_v41, 4 }
 0x1e0   : > { %v987_v44 = vadd.f32 %v986_v43, %v985_v41 }
 0x1e2   : > { %v988_v45 = vrot.slane %v987_v44, 2 }
 0x1e4   : > { %v989_v46 = vadd.f32 %v988_v45, %v987_v44 }
 0x1e6   : > { %v990_v16 = vrot.slane %v989_v46, 1 }
 0x1e8   : > { %v991_v47 = vadd.f32 %v990_v16, %v989_v46 }
 0x1ea   : > { %1847 = vpush %v991_v47 }
 0x208   : > { %v1392_v48 = vpop.xlane.xlu0 %1391 }
 0x209   : > { %v1393_v49 = vrot.slane %v1392_v48, 4 }
 0x20b   : > { %v1394_v50 = vadd.f32 %v1393_v49, %v1392_v48 }
 0x20d   : > { %v1395_v51 = vrot.slane %v1394_v50, 2 }
 0x20f   : > { %v1396_v53 = vadd.f32 %v1395_v51, %v1394_v50 }
 0x211   : > { %v1397_v29 = vrot.slane %v1396_v53, 1 }
 0x213   : > { %v1398_v56 = vadd.f32 %v1397_v29, %v1396_v53 }
 0x215   : > { %1849 = vpush %v1398_v56 }
 0x21b   : > { %s1848_s12 = spop %1847 }
 0x21c   : > { %v993_v57 = vstv %s1848_s12 }
 0x21d   : > { %994 = vst [vmem:[%s545_s28] sm:$0xff] %v993_v57 }
 0x244   : > { %1423 = sbr.rel (!%p2012_p5) target bundleno = 587 (0x24b), region = 166 }
 0x246   : > { %s1850_s13 = spop %1849 }
 0x247   : > { %s1400_s20 = smul.f32 200.0, %s1850_s13 }
 0x249   : > { %v1401_v54 = vstv %s1400_s20 }
 0x24a   : > { %1402 = vst [vmem:[%s549_s19] sm:$0xff] %v1401_v54 }
 0x24b PF: > { %p17_p11 = scmp.ge.s32.totalorder %s1996_s11, 4   ;;  %s2313_s29 = smov %s1922_s30 }
 0x24c   : > { %s2314_s30 = smov %s2006_s14  ;;  %s2315_s9 = smov %s1996_s11 }
 0x24d   :  { %19 = sbr.rel (!%p17_p11) target bundleno = 4 (0x4), region = 350 }

</bundles_post_ra>
